<compile_context>
chip_gen: v7x
topology: tpu7x:2x2x1
jax: 0.10.0
libtpu: 0.0.40
codegen_flags: <defaults>
</compile_context>

<pallas_src>
import functools

import jax
import jax.numpy as jnp
from jax.experimental import pallas as pl
from jax.experimental.pallas import tpu as pltpu


# `featureDepth` / `attentionDepth` are undefined globals in the original file;
# pick small deterministic values consistent with the module structure.
FEATURE_DEPTH = 8      # num / nf
ATTENTION_DEPTH = 4    # gc (growth channels)
SE_REDUCTION = 4

# Flip to run the MXU matmuls in bf16 (f32 accumulation) for ~2-4x matmul
# throughput on v6e/v7x; loosen the allclose tolerance if you do.
USE_BF16_MXU = False


# --------------------------------------------------------------------------
# helpers
# --------------------------------------------------------------------------
def _apply_act(y, act):
    if act == "relu":
        return jnp.maximum(y, 0.0)
    if act == "lrelu":
        return jnp.maximum(y, 0.2 * y)  # LeakyReLU(0.2)
    return y


def _mxu_inputs(w, x):
    if USE_BF16_MXU:
        return w.astype(jnp.bfloat16), x.astype(jnp.bfloat16)
    return w, x


def _pick_n_tile(n, max_tile=512):
    """Largest multiple of 128 <= max_tile dividing n, else the full dim."""
    if n % 128 != 0:
        return n
    t = min(n, max_tile)
    while n % t != 0:
        t -= 128
    return t


# --------------------------------------------------------------------------
# kernels
# --------------------------------------------------------------------------
def _mm_act_kernel(w_ref, b_ref, x_ref, o_ref, *, act):
    # y = act(W @ X + b)          W:(Cout,K)  X:(K,TN)  b:(Cout,1)
    w, x = _mxu_inputs(w_ref[...], x_ref[...])
    y = jnp.dot(w, x, preferred_element_type=jnp.float32) + b_ref[...]
    o_ref[...] = _apply_act(y, act).astype(o_ref.dtype)


def _mm_res_kernel(w_ref, b_ref, x_ref, r_ref, o_ref, *, act, scale):
    # y = act((W @ X + b) * scale + residual)
    w, x = _mxu_inputs(w_ref[...], x_ref[...])
    y = jnp.dot(w, x, preferred_element_type=jnp.float32) + b_ref[...]
    y = y * scale + r_ref[...].astype(jnp.float32)
    o_ref[...] = _apply_act(y, act).astype(o_ref.dtype)


def _se_kernel(w1_ref, w2_ref, x_ref, o_ref):
    # Squeeze-Excite: gate = sigmoid(W2 @ relu(W1 @ mean_spatial(x)))
    x = x_ref[...].astype(jnp.float32)                      # (C, N)
    inv_n = 1.0 / x.shape[1]
    s = jnp.sum(x, axis=1, keepdims=True) * inv_n           # (C, 1)
    h = jnp.maximum(
        jnp.dot(w1_ref[...], s, preferred_element_type=jnp.float32), 0.0)
    z = jnp.dot(w2_ref[...], h, preferred_element_type=jnp.float32)
    gate = 1.0 / (1.0 + jnp.exp(-z))                        # (C, 1)
    o_ref[...] = (x * gate).astype(o_ref.dtype)


def _scale_shift_kernel(x_ref, o_ref):
    # x * 2 - 1
    o_ref[...] = (x_ref[...] * 2.0 - 1.0).astype(o_ref.dtype)


def _head_kernel(w_ref, b_ref, cat_ref, res_ref, o_ref):
    # out = clamp((tanh(residual + Wt @ relu(cat) + bt) + 1) / 2, 0, 1)
    cat = jnp.maximum(cat_ref[...].astype(jnp.float32), 0.0)
    w, cat = _mxu_inputs(w_ref[...], cat)
    y = jnp.dot(w, cat, preferred_element_type=jnp.float32) + b_ref[...]
    y = jnp.tanh(y + res_ref[...].astype(jnp.float32))
    y = (y + 1.0) * 0.5
    o_ref[...] = jnp.clip(y, 0.0, 1.0).astype(o_ref.dtype)


# --------------------------------------------------------------------------
# pallas_call wrappers
# --------------------------------------------------------------------------
def _matmul_conv(x_flat, w_mat, bias, *, act="linear", res=None, scale=1.0):
    """x_flat:(B,K,N)  w_mat:(Cout,K)  bias:(Cout,)|None  res:(B,Cout,N)|None."""
    B, K, N = x_flat.shape
    Cout = w_mat.shape[0]
    if bias is None:
        bias = jnp.zeros((Cout,), dtype=jnp.float32)
    b2 = bias.reshape(Cout, 1).astype(jnp.float32)
    w_mat = w_mat.astype(jnp.float32)

    tn = _pick_n_tile(N)
    grid = (B, N // tn)

    in_specs = [
        pl.BlockSpec((Cout, K), lambda b, j: (0, 0)),
        pl.BlockSpec((Cout, 1), lambda b, j: (0, 0)),
        pl.BlockSpec((None, K, tn), lambda b, j: (b, 0, j)),
    ]
    args = [w_mat, b2, x_flat]
    if res is not None:
        in_specs.append(pl.BlockSpec((None, Cout, tn), lambda b, j: (b, 0, j)))
        args.append(res)
        kernel = functools.partial(_mm_res_kernel, act=act, scale=scale)
    else:
        kernel = functools.partial(_mm_act_kernel, act=act)

    return pl.pallas_call(
        kernel,
        out_shape=jax.ShapeDtypeStruct((B, Cout, N), x_flat.dtype),
        grid_spec=pl.GridSpec(
            grid=grid,
            in_specs=in_specs,
            out_specs=pl.BlockSpec((None, Cout, tn), lambda b, j: (b, 0, j)),
        ),
        compiler_params=pltpu.CompilerParams(
            dimension_semantics=("parallel", "parallel")),
    )(*args)


def _im2col_3x3(x):
    """(B,C,H,W) -> (B, 9*C, H*W) patches, (ky,kx,c) ordering. Plain-JAX glue."""
    B, C, H, W = x.shape
    xp = jnp.pad(x, ((0, 0), (0, 0), (1, 1), (1, 1)))
    cols = [xp[:, :, dy:dy + H, dx:dx + W] for dy in range(3) for dx in range(3)]
    return jnp.concatenate(cols, axis=1).reshape(B, 9 * C, H * W)


def conv3x3(x, w, b, *, act="linear", res=None, scale=1.0):
    """3x3 conv, stride 1, pad 1, via im2col + fused matmul kernel."""
    B, C, H, W = x.shape
    Cout = w.shape[0]
    patches = _im2col_3x3(x)
    w_mat = jnp.transpose(w, (0, 2, 3, 1)).reshape(Cout, 9 * C)
    res_flat = None if res is None else res.reshape(B, Cout, H * W)
    out = _matmul_conv(patches, w_mat, b, act=act, res=res_flat, scale=scale)
    return out.reshape(B, Cout, H, W)


def conv1x1(x, w, b, *, act="linear", res=None, scale=1.0):
    B, C, H, W = x.shape
    Cout = w.shape[0]
    w_mat = w.reshape(Cout, C)
    res_flat = None if res is None else res.reshape(B, Cout, H * W)
    out = _matmul_conv(x.reshape(B, C, H * W), w_mat, b,
                       act=act, res=res_flat, scale=scale)
    return out.reshape(B, Cout, H, W)


def se_layer(x, w1, w2):
    B, C, H, W = x.shape
    N = H * W
    Ch = w1.shape[0]
    out = pl.pallas_call(
        _se_kernel,
        out_shape=jax.ShapeDtypeStruct((B, C, N), x.dtype),
        grid_spec=pl.GridSpec(
            grid=(B,),
            in_specs=[
                pl.BlockSpec((Ch, C), lambda b: (0, 0)),
                pl.BlockSpec((C, Ch), lambda b: (0, 0)),
                pl.BlockSpec((None, C, N), lambda b: (b, 0, 0)),
            ],
            out_specs=pl.BlockSpec((None, C, N), lambda b: (b, 0, 0)),
        ),
        compiler_params=pltpu.CompilerParams(dimension_semantics=("parallel",)),
    )(w1.astype(jnp.float32), w2.astype(jnp.float32), x.reshape(B, C, N))
    return out.reshape(B, C, H, W)


def scale_shift(x):
    B, C, H, W = x.shape
    N = H * W
    out = pl.pallas_call(
        _scale_shift_kernel,
        out_shape=jax.ShapeDtypeStruct((B, C, N), x.dtype),
        grid_spec=pl.GridSpec(
            grid=(B,),
            in_specs=[pl.BlockSpec((None, C, N), lambda b: (b, 0, 0))],
            out_specs=pl.BlockSpec((None, C, N), lambda b: (b, 0, 0)),
        ),
        compiler_params=pltpu.CompilerParams(dimension_semantics=("parallel",)),
    )(x.reshape(B, C, N))
    return out.reshape(B, C, H, W)


def head_pallas(cat_flat, w_mat, bias, res_flat):
    """cat:(B,3*nf,N)  w:(3,3*nf)  bias:(3,)  res:(B,3,N) -> (B,3,N)."""
    B, K, N = cat_flat.shape
    Cout = w_mat.shape[0]
    tn = _pick_n_tile(N)
    grid = (B, N // tn)
    return pl.pallas_call(
        _head_kernel,
        out_shape=jax.ShapeDtypeStruct((B, Cout, N), cat_flat.dtype),
        grid_spec=pl.GridSpec(
            grid=grid,
            in_specs=[
                pl.BlockSpec((Cout, K), lambda b, j: (0, 0)),
                pl.BlockSpec((Cout, 1), lambda b, j: (0, 0)),
                pl.BlockSpec((None, K, tn), lambda b, j: (b, 0, j)),
                pl.BlockSpec((None, Cout, tn), lambda b, j: (b, 0, j)),
            ],
            out_specs=pl.BlockSpec((None, Cout, tn), lambda b, j: (b, 0, j)),
        ),
        compiler_params=pltpu.CompilerParams(
            dimension_semantics=("parallel", "parallel")),
    )(w_mat.astype(jnp.float32), bias.reshape(Cout, 1).astype(jnp.float32),
      cat_flat, res_flat)


# --------------------------------------------------------------------------
# network forward (Pallas path)
# --------------------------------------------------------------------------
def rdb_forward(p, x, *, out_act):
    x1 = conv3x3(x, p["w1"], p["b1"], act="lrelu")
    x2 = conv3x3(jnp.concatenate([x, x1], 1), p["w2"], p["b2"], act="lrelu")
    x3 = conv3x3(jnp.concatenate([x, x1, x2], 1), p["w3"], p["b3"], act="lrelu")
    x4 = conv3x3(jnp.concatenate([x, x1, x2, x3], 1), p["w4"], p["b4"], act="lrelu")
    # conv5 -> *0.2 + x (residual), followed by the GRDB-level ReLU (fused)
    return conv3x3(jnp.concatenate([x, x1, x2, x3, x4], 1), p["w5"], p["b5"],
                   act=out_act, res=x, scale=0.2)


def grdb_forward(p, x, *, final_act):
    x1 = rdb_forward(p["rdb1"], x, out_act="relu")
    x2 = rdb_forward(p["rdb2"], x1, out_act="relu")
    x3 = rdb_forward(p["rdb3"], x2, out_act="relu")
    # 1x1 fuse conv (no bias) -> *0.2 + x ; ReLU only after the last GRDB.
    return conv1x1(jnp.concatenate([x1, x2, x3], 1), p["fuse_w"], None,
                   act=final_act, res=x, scale=0.2)


def generator_forward(params, x):
    B, Cin, H, W = x.shape
    N = H * W
    nf = params["conv1_w"].shape[0]

    x_m = scale_shift(x)                                            # x*2 - 1
    x1 = conv1x1(x_m, params["conv1_w"], params["conv1_b"], act="relu")
    x1_se = se_layer(x1, params["se_w1"], params["se_w2"])

    feat = x1
    n_grdb = len(params["grdb"])
    for gi, gp in enumerate(params["grdb"]):
        feat = grdb_forward(gp, feat,
                            final_act="relu" if gi == n_grdb - 1 else "linear")
    x_grdb = feat

    cat = jnp.concatenate([x_grdb, x1_se, x1], axis=1).reshape(B, 3 * nf, N)
    # ConvTranspose2d(3*nf, 3, k=1) == 1x1 conv with weight (in,out,1,1).T
    wt_mat = jnp.transpose(params["tconv_w"][:, :, 0, 0], (1, 0))   # (3, 3*nf)
    out = head_pallas(cat, wt_mat, params["tconv_b"], x_m.reshape(B, Cin, N))
    return out.reshape(B, Cin, H, W)


# --------------------------------------------------------------------------
# pure-JAX reference (matches the PyTorch module semantics)
# --------------------------------------------------------------------------
def _conv_ref(x, w, b=None, padding=0):
    out = jax.lax.conv_general_dilated(
        x, w, window_strides=(1, 1),
        padding=((padding, padding), (padding, padding)),
        dimension_numbers=("NCHW", "OIHW", "NCHW"))
    if b is not None:
        out = out + b.reshape(1, -1, 1, 1)
    return out


def _lrelu_ref(x):
    return jnp.where(x > 0, x, 0.2 * x)


def _rdb_ref(p, x):
    x1 = _lrelu_ref(_conv_ref(x, p["w1"], p["b1"], 1))
    x2 = _lrelu_ref(_conv_ref(jnp.concatenate([x, x1], 1), p["w2"], p["b2"], 1))
    x3 = _lrelu_ref(_conv_ref(jnp.concatenate([x, x1, x2], 1), p["w3"], p["b3"], 1))
    x4 = _lrelu_ref(_conv_ref(jnp.concatenate([x, x1, x2, x3], 1), p["w4"], p["b4"], 1))
    x5 = _conv_ref(jnp.concatenate([x, x1, x2, x3, x4], 1), p["w5"], p["b5"], 1)
    return x5 * 0.2 + x


def _grdb_ref(p, x):
    x1 = jnp.maximum(_rdb_ref(p["rdb1"], x), 0.0)
    x2 = jnp.maximum(_rdb_ref(p["rdb2"], x1), 0.0)
    x3 = jnp.maximum(_rdb_ref(p["rdb3"], x2), 0.0)
    x4 = _conv_ref(jnp.concatenate([x1, x2, x3], 1), p["fuse_w"], None, 0)
    return x4 * 0.2 + x


def generator_ref(params, x):
    x = x * 2.0 - 1.0
    residual = x
    x1 = jnp.maximum(_conv_ref(x, params["conv1_w"], params["conv1_b"], 0), 0.0)
    # SE layer
    s = jnp.mean(x1, axis=(2, 3))                           # (B, C)
    h = jnp.maximum(s @ params["se_w1"].T, 0.0)             # (B, Ch)
    g = jax.nn.sigmoid(h @ params["se_w2"].T)               # (B, C)
    x1_se = x1 * g[:, :, None, None]
    feat = x1
    for gp in params["grdb"]:
        feat = _grdb_ref(gp, feat)
    x_grdb = jnp.maximum(feat, 0.0)
    cat = jnp.maximum(jnp.concatenate([x_grdb, x1_se, x1], 1), 0.0)
    w_eq = jnp.transpose(params["tconv_w"], (1, 0, 2, 3))   # (3, 3*nf, 1, 1)
    out = _conv_ref(cat, w_eq, params["tconv_b"], 0)
    out = residual + out
    y = jnp.tanh(out)
    y = (y + 1.0) / 2.0
    return jnp.clip(y, 0.0, 1.0)


# --------------------------------------------------------------------------
# parameter init
# --------------------------------------------------------------------------
def init_params(key, nf, gc, reduction):
    keys = iter(jax.random.split(key, 256))

    def w(shape, scale=0.1):
        return jax.random.normal(next(keys), shape, dtype=jnp.float32) * scale

    def rdb_params():
        return {
            "w1": w((gc, nf, 3, 3)),          "b1": w((gc,), 0.05),
            "w2": w((gc, nf + gc, 3, 3)),     "b2": w((gc,), 0.05),
            "w3": w((gc, nf + 2 * gc, 3, 3)), "b3": w((gc,), 0.05),
            "w4": w((gc, nf + 3 * gc, 3, 3)), "b4": w((gc,), 0.05),
            "w5": w((nf, nf + 4 * gc, 3, 3)), "b5": w((nf,), 0.05),
        }

    def grdb_params():
        return {
            "rdb1": rdb_params(), "rdb2": rdb_params(), "rdb3": rdb_params(),
            "fuse_w": w((nf, 3 * nf, 1, 1)),
        }

    return {
        "conv1_w": w((nf, 3, 1, 1)), "conv1_b": w((nf,), 0.05),
        "se_w1": w((nf // reduction, nf)), "se_w2": w((nf, nf // reduction)),
        "grdb": [grdb_params() for _ in range(3)],
        "tconv_w": w((3 * nf, 3, 1, 1)), "tconv_b": w((3,), 0.05),
    }


# --------------------------------------------------------------------------
if __name__ == "__main__":
    key = jax.random.PRNGKey(0)
    key, xkey = jax.random.split(key)

    B, H, W = 2, 16, 16
    x = jax.random.uniform(xkey, (B, 3, H, W), dtype=jnp.float32)
    params = init_params(key, FEATURE_DEPTH, ATTENTION_DEPTH, SE_REDUCTION)

    fwd = jax.jit(generator_forward)
    out = jax.block_until_ready(fwd(params, x))
    assert out.shape == (B, 3, H, W)

    ref = generator_ref(params, x)
    max_err = float(jnp.max(jnp.abs(out - ref)))
    assert jnp.allclose(out, ref, atol=1e-4, rtol=1e-4), max_err

    print("KERNEL_OK")
</pallas_src>

<mosaic_0001>
module attributes {stable_mosaic.version = 11 : i64} {
  func.func @_mm_act_kernel(%arg0: i32, %arg1: i32, %arg2: memref<8x3xf32, #tpu.memory_space<vmem>>, %arg3: memref<8x1xf32, #tpu.memory_space<vmem>>, %arg4: memref<1x3x256xf32, #tpu.memory_space<vmem>>, %arg5: memref<1x8x256xf32, #tpu.memory_space<vmem>>) attributes {dimension_semantics = [#tpu.dimension_semantics<parallel>, #tpu.dimension_semantics<parallel>], iteration_bounds = array<i64: 2, 1>, scalar_prefetch = 0 : i64, scratch_operands = 0 : i64, tpu.core_type = #tpu.core_type<tc>, window_params = [{pipeline_mode = #tpu.pipeline_mode<synchronous>, transform_indices = @transform_0, window_bounds = array<i64: 8, 3>}, {pipeline_mode = #tpu.pipeline_mode<synchronous>, transform_indices = @transform_1, window_bounds = array<i64: 8, 1>}, {transform_indices = @transform_2, window_bounds = array<i64: 1, 3, 256>}, {transform_indices = @transform_3, window_bounds = array<i64: 1, 8, 256>}]} {
    %c0 = arith.constant 0 : index
    %c0_0 = arith.constant 0 : index
    %0 = vector.load %arg2[%c0, %c0_0] : memref<8x3xf32, #tpu.memory_space<vmem>>, vector<8x3xf32>
    %c0_1 = arith.constant 0 : index
    %c0_2 = arith.constant 0 : index
    %c0_3 = arith.constant 0 : index
    %1 = vector.load %arg4[%c0_1, %c0_2, %c0_3] : memref<1x3x256xf32, #tpu.memory_space<vmem>>, vector<1x3x256xf32>
    %2 = vector.shape_cast %1 : vector<1x3x256xf32> to vector<3x256xf32>
    %cst = arith.constant dense<0.000000e+00> : vector<8x256xf32>
    %3 = tpu.matmul %0, %2, %cst {dimension_numbers = #tpu.dot_dimension_numbers<[1], [0], [0], [1], [0, 0, 1, 1], [], []>} : vector<8x3xf32>, vector<3x256xf32>, vector<8x256xf32> -> vector<8x256xf32>
    %c0_4 = arith.constant 0 : index
    %c0_5 = arith.constant 0 : index
    %4 = vector.load %arg3[%c0_4, %c0_5] : memref<8x1xf32, #tpu.memory_space<vmem>>, vector<8x1xf32>
    %5 = vector.broadcast %4 : vector<8x1xf32> to vector<8x256xf32>
    %6 = arith.addf %3, %5 : vector<8x256xf32>
    %cst_6 = arith.constant 0.000000e+00 : f32
    %7 = vector.broadcast %cst_6 : f32 to vector<8x256xf32>
    %8 = arith.maximumf %6, %7 : vector<8x256xf32>
    %c0_7 = arith.constant 0 : index
    %c0_8 = arith.constant 0 : index
    %c0_9 = arith.constant 0 : index
    %9 = vector.load %arg5[%c0_7, %c0_8, %c0_9] : memref<1x8x256xf32, #tpu.memory_space<vmem>>, vector<1x8x256xf32>
    %10 = vector.shape_cast %9 : vector<1x8x256xf32> to vector<8x256xf32>
    %11 = vector.shape_cast %8 : vector<8x256xf32> to vector<1x8x256xf32>
    tpu.vector_store %arg5[%c0_7, %c0_8, %c0_9], %11 {strides = array<i32>} : memref<1x8x256xf32, #tpu.memory_space<vmem>>, vector<1x8x256xf32>,
    return
  }
  func.func @transform_0(%arg0: i32, %arg1: i32) -> (i32, i32) {
    %c0_i32 = arith.constant 0 : i32
    %c0_i32_0 = arith.constant 0 : i32
    %c0_i32_1 = arith.constant 0 : i32
    return %c0_i32, %c0_i32_0 : i32, i32
  }
  func.func @transform_1(%arg0: i32, %arg1: i32) -> (i32, i32) {
    %c0_i32 = arith.constant 0 : i32
    %c0_i32_0 = arith.constant 0 : i32
    %c0_i32_1 = arith.constant 0 : i32
    return %c0_i32, %c0_i32_0 : i32, i32
  }
  func.func @transform_2(%arg0: i32, %arg1: i32) -> (i32, i32, i32) {
    %c0_i32 = arith.constant 0 : i32
    %c0_i32_0 = arith.constant 0 : i32
    return %arg0, %c0_i32, %arg1 : i32, i32, i32
  }
  func.func @transform_3(%arg0: i32, %arg1: i32) -> (i32, i32, i32) {
    %c0_i32 = arith.constant 0 : i32
    %c0_i32_0 = arith.constant 0 : i32
    return %arg0, %c0_i32, %arg1 : i32, i32, i32
  }
}

module attributes {stable_mosaic.version = 11 : i64} {
  func.func @_scale_shift_kernel(%arg0: i32, %arg1: memref<1x3x256xf32, #tpu.memory_space<vmem>>, %arg2: memref<1x3x256xf32, #tpu.memory_space<vmem>>) attributes {dimension_semantics = [#tpu.dimension_semantics<parallel>], iteration_bounds = array<i64: 2>, scalar_prefetch = 0 : i64, scratch_operands = 0 : i64, tpu.core_type = #tpu.core_type<tc>, window_params = [{transform_indices = @transform_0, window_bounds = array<i64: 1, 3, 256>}, {transform_indices = @transform_1, window_bounds = array<i64: 1, 3, 256>}]} {
    %c0 = arith.constant 0 : index
    %c0_0 = arith.constant 0 : index
    %c0_1 = arith.constant 0 : index
    %0 = vector.load %arg1[%c0, %c0_0, %c0_1] : memref<1x3x256xf32, #tpu.memory_space<vmem>>, vector<1x3x256xf32>
    %1 = vector.shape_cast %0 : vector<1x3x256xf32> to vector<3x256xf32>
    %cst = arith.constant 2.000000e+00 : f32
    %2 = vector.broadcast %cst : f32 to vector<3x256xf32>
    %3 = arith.mulf %1, %2 : vector<3x256xf32>
    %cst_2 = arith.constant 1.000000e+00 : f32
    %4 = vector.broadcast %cst_2 : f32 to vector<3x256xf32>
    %5 = arith.subf %3, %4 : vector<3x256xf32>
    %c0_3 = arith.constant 0 : index
    %c0_4 = arith.constant 0 : index
    %c0_5 = arith.constant 0 : index
    %6 = vector.load %arg2[%c0_3, %c0_4, %c0_5] : memref<1x3x256xf32, #tpu.memory_space<vmem>>, vector<1x3x256xf32>
    %7 = vector.shape_cast %6 : vector<1x3x256xf32> to vector<3x256xf32>
    %8 = vector.shape_cast %5 : vector<3x256xf32> to vector<1x3x256xf32>
    tpu.vector_store %arg2[%c0_3, %c0_4, %c0_5], %8 {strides = array<i32>} : memref<1x3x256xf32, #tpu.memory_space<vmem>>, vector<1x3x256xf32>,
    return
  }
  func.func @transform_0(%arg0: i32) -> (i32, i32, i32) {
    %c0_i32 = arith.constant 0 : i32
    %c0_i32_0 = arith.constant 0 : i32
    %c0_i32_1 = arith.constant 0 : i32
    return %arg0, %c0_i32, %c0_i32_0 : i32, i32, i32
  }
  func.func @transform_1(%arg0: i32) -> (i32, i32, i32) {
    %c0_i32 = arith.constant 0 : i32
    %c0_i32_0 = arith.constant 0 : i32
    %c0_i32_1 = arith.constant 0 : i32
    return %arg0, %c0_i32, %c0_i32_0 : i32, i32, i32
  }
}

module attributes {stable_mosaic.version = 11 : i64} {
  func.func @_se_kernel(%arg0: i32, %arg1: memref<2x8xf32, #tpu.memory_space<vmem>>, %arg2: memref<8x2xf32, #tpu.memory_space<vmem>>, %arg3: memref<1x8x256xf32, #tpu.memory_space<vmem>>, %arg4: memref<1x8x256xf32, #tpu.memory_space<vmem>>) attributes {dimension_semantics = [#tpu.dimension_semantics<parallel>], iteration_bounds = array<i64: 2>, scalar_prefetch = 0 : i64, scratch_operands = 0 : i64, tpu.core_type = #tpu.core_type<tc>, window_params = [{pipeline_mode = #tpu.pipeline_mode<synchronous>, transform_indices = @transform_0, window_bounds = array<i64: 2, 8>}, {pipeline_mode = #tpu.pipeline_mode<synchronous>, transform_indices = @transform_1, window_bounds = array<i64: 8, 2>}, {transform_indices = @transform_2, window_bounds = array<i64: 1, 8, 256>}, {transform_indices = @transform_3, window_bounds = array<i64: 1, 8, 256>}]} {
    %c0 = arith.constant 0 : index
    %c0_0 = arith.constant 0 : index
    %c0_1 = arith.constant 0 : index
    %0 = vector.load %arg3[%c0, %c0_0, %c0_1] : memref<1x8x256xf32, #tpu.memory_space<vmem>>, vector<1x8x256xf32>
    %1 = vector.shape_cast %0 : vector<1x8x256xf32> to vector<8x256xf32>
    %cst = arith.constant dense<0.000000e+00> : vector<8xf32>
    %2 = vector.multi_reduction <add>, %1, %cst [1] : vector<8x256xf32> to vector<8xf32>
    %3 = vector.shape_cast %2 : vector<8xf32> to vector<8x1xf32>
    %cst_2 = arith.constant 3.906250e-03 : f32
    %4 = vector.broadcast %cst_2 : f32 to vector<8x1xf32>
    %5 = arith.mulf %3, %4 : vector<8x1xf32>
    %c0_3 = arith.constant 0 : index
    %c0_4 = arith.constant 0 : index
    %6 = vector.load %arg1[%c0_3, %c0_4] : memref<2x8xf32, #tpu.memory_space<vmem>>, vector<2x8xf32>
    %cst_5 = arith.constant dense<0.000000e+00> : vector<2x1xf32>
    %7 = tpu.matmul %6, %5, %cst_5 {dimension_numbers = #tpu.dot_dimension_numbers<[1], [0], [0], [1], [0, 0, 1, 1], [], []>} : vector<2x8xf32>, vector<8x1xf32>, vector<2x1xf32> -> vector<2x1xf32>
    %cst_6 = arith.constant 0.000000e+00 : f32
    %8 = vector.broadcast %cst_6 : f32 to vector<2x1xf32>
    %9 = arith.maximumf %7, %8 : vector<2x1xf32>
    %c0_7 = arith.constant 0 : index
    %c0_8 = arith.constant 0 : index
    %10 = vector.load %arg2[%c0_7, %c0_8] : memref<8x2xf32, #tpu.memory_space<vmem>>, vector<8x2xf32>
    %cst_9 = arith.constant dense<0.000000e+00> : vector<8x1xf32>
    %11 = tpu.matmul %10, %9, %cst_9 {dimension_numbers = #tpu.dot_dimension_numbers<[1], [0], [0], [1], [0, 0, 1, 1], [], []>} : vector<8x2xf32>, vector<2x1xf32>, vector<8x1xf32> -> vector<8x1xf32>
    %cst_10 = arith.constant 0.000000e+00 : f32
    %12 = vector.broadcast %cst_10 : f32 to vector<8x1xf32>
    %13 = arith.subf %12, %11 : vector<8x1xf32>
    %14 = math.exp %13 : vector<8x1xf32>
    %cst_11 = arith.constant 1.000000e+00 : f32
    %15 = vector.broadcast %cst_11 : f32 to vector<8x1xf32>
    %16 = arith.addf %15, %14 : vector<8x1xf32>
    %cst_12 = arith.constant 1.000000e+00 : f32
    %17 = vector.broadcast %cst_12 : f32 to vector<8x1xf32>
    %18 = arith.divf %17, %16 : vector<8x1xf32>
    %19 = vector.broadcast %18 : vector<8x1xf32> to vector<8x256xf32>
    %20 = arith.mulf %1, %19 : vector<8x256xf32>
    %c0_13 = arith.constant 0 : index
    %c0_14 = arith.constant 0 : index
    %c0_15 = arith.constant 0 : index
    %21 = vector.load %arg4[%c0_13, %c0_14, %c0_15] : memref<1x8x256xf32, #tpu.memory_space<vmem>>, vector<1x8x256xf32>
    %22 = vector.shape_cast %21 : vector<1x8x256xf32> to vector<8x256xf32>
    %23 = vector.shape_cast %20 : vector<8x256xf32> to vector<1x8x256xf32>
    tpu.vector_store %arg4[%c0_13, %c0_14, %c0_15], %23 {strides = array<i32>} : memref<1x8x256xf32, #tpu.memory_space<vmem>>, vector<1x8x256xf32>,
    return
  }
  func.func @transform_0(%arg0: i32) -> (i32, i32) {
    %c0_i32 = arith.constant 0 : i32
    %c0_i32_0 = arith.constant 0 : i32
    %c0_i32_1 = arith.constant 0 : i32
    return %c0_i32, %c0_i32_0 : i32, i32
  }
  func.func @transform_1(%arg0: i32) -> (i32, i32) {
    %c0_i32 = arith.constant 0 : i32
    %c0_i32_0 = arith.constant 0 : i32
    %c0_i32_1 = arith.constant 0 : i32
    return %c0_i32, %c0_i32_0 : i32, i32
  }
  func.func @transform_2(%arg0: i32) -> (i32, i32, i32) {
    %c0_i32 = arith.constant 0 : i32
    %c0_i32_0 = arith.constant 0 : i32
    %c0_i32_1 = arith.constant 0 : i32
    return %arg0, %c0_i32, %c0_i32_0 : i32, i32, i32
  }
  func.func @transform_3(%arg0: i32) -> (i32, i32, i32) {
    %c0_i32 = arith.constant 0 : i32
    %c0_i32_0 = arith.constant 0 : i32
    %c0_i32_1 = arith.constant 0 : i32
    return %arg0, %c0_i32, %c0_i32_0 : i32, i32, i32
  }
}

module attributes {stable_mosaic.version = 11 : i64} {
  func.func @_mm_act_kernel(%arg0: i32, %arg1: i32, %arg2: memref<4x72xf32, #tpu.memory_space<vmem>>, %arg3: memref<4x1xf32, #tpu.memory_space<vmem>>, %arg4: memref<1x72x256xf32, #tpu.memory_space<vmem>>, %arg5: memref<1x4x256xf32, #tpu.memory_space<vmem>>) attributes {dimension_semantics = [#tpu.dimension_semantics<parallel>, #tpu.dimension_semantics<parallel>], iteration_bounds = array<i64: 2, 1>, scalar_prefetch = 0 : i64, scratch_operands = 0 : i64, tpu.core_type = #tpu.core_type<tc>, window_params = [{pipeline_mode = #tpu.pipeline_mode<synchronous>, transform_indices = @transform_0, window_bounds = array<i64: 4, 72>}, {pipeline_mode = #tpu.pipeline_mode<synchronous>, transform_indices = @transform_1, window_bounds = array<i64: 4, 1>}, {transform_indices = @transform_2, window_bounds = array<i64: 1, 72, 256>}, {transform_indices = @transform_3, window_bounds = array<i64: 1, 4, 256>}]} {
    %c0 = arith.constant 0 : index
    %c0_0 = arith.constant 0 : index
    %0 = vector.load %arg2[%c0, %c0_0] : memref<4x72xf32, #tpu.memory_space<vmem>>, vector<4x72xf32>
    %c0_1 = arith.constant 0 : index
    %c0_2 = arith.constant 0 : index
    %c0_3 = arith.constant 0 : index
    %1 = vector.load %arg4[%c0_1, %c0_2, %c0_3] : memref<1x72x256xf32, #tpu.memory_space<vmem>>, vector<1x72x256xf32>
    %2 = vector.shape_cast %1 : vector<1x72x256xf32> to vector<72x256xf32>
    %cst = arith.constant dense<0.000000e+00> : vector<4x256xf32>
    %3 = tpu.matmul %0, %2, %cst {dimension_numbers = #tpu.dot_dimension_numbers<[1], [0], [0], [1], [0, 0, 1, 1], [], []>} : vector<4x72xf32>, vector<72x256xf32>, vector<4x256xf32> -> vector<4x256xf32>
    %c0_4 = arith.constant 0 : index
    %c0_5 = arith.constant 0 : index
    %4 = vector.load %arg3[%c0_4, %c0_5] : memref<4x1xf32, #tpu.memory_space<vmem>>, vector<4x1xf32>
    %5 = vector.broadcast %4 : vector<4x1xf32> to vector<4x256xf32>
    %6 = arith.addf %3, %5 : vector<4x256xf32>
    %cst_6 = arith.constant 2.000000e-01 : f32
    %7 = vector.broadcast %cst_6 : f32 to vector<4x256xf32>
    %8 = arith.mulf %7, %6 : vector<4x256xf32>
    %9 = arith.maximumf %6, %8 : vector<4x256xf32>
    %c0_7 = arith.constant 0 : index
    %c0_8 = arith.constant 0 : index
    %c0_9 = arith.constant 0 : index
    %10 = vector.load %arg5[%c0_7, %c0_8, %c0_9] : memref<1x4x256xf32, #tpu.memory_space<vmem>>, vector<1x4x256xf32>
    %11 = vector.shape_cast %10 : vector<1x4x256xf32> to vector<4x256xf32>
    %12 = vector.shape_cast %9 : vector<4x256xf32> to vector<1x4x256xf32>
    tpu.vector_store %arg5[%c0_7, %c0_8, %c0_9], %12 {strides = array<i32>} : memref<1x4x256xf32, #tpu.memory_space<vmem>>, vector<1x4x256xf32>,
    return
  }
  func.func @transform_0(%arg0: i32, %arg1: i32) -> (i32, i32) {
    %c0_i32 = arith.constant 0 : i32
    %c0_i32_0 = arith.constant 0 : i32
    %c0_i32_1 = arith.constant 0 : i32
    return %c0_i32, %c0_i32_0 : i32, i32
  }
  func.func @transform_1(%arg0: i32, %arg1: i32) -> (i32, i32) {
    %c0_i32 = arith.constant 0 : i32
    %c0_i32_0 = arith.constant 0 : i32
    %c0_i32_1 = arith.constant 0 : i32
    return %c0_i32, %c0_i32_0 : i32, i32
  }
  func.func @transform_2(%arg0: i32, %arg1: i32) -> (i32, i32, i32) {
    %c0_i32 = arith.constant 0 : i32
    %c0_i32_0 = arith.constant 0 : i32
    return %arg0, %c0_i32, %arg1 : i32, i32, i32
  }
  func.func @transform_3(%arg0: i32, %arg1: i32) -> (i32, i32, i32) {
    %c0_i32 = arith.constant 0 : i32
    %c0_i32_0 = arith.constant 0 : i32
    return %arg0, %c0_i32, %arg1 : i32, i32, i32
  }
}

module attributes {stable_mosaic.version = 11 : i64} {
  func.func @_mm_act_kernel(%arg0: i32, %arg1: i32, %arg2: memref<4x108xf32, #tpu.memory_space<vmem>>, %arg3: memref<4x1xf32, #tpu.memory_space<vmem>>, %arg4: memref<1x108x256xf32, #tpu.memory_space<vmem>>, %arg5: memref<1x4x256xf32, #tpu.memory_space<vmem>>) attributes {dimension_semantics = [#tpu.dimension_semantics<parallel>, #tpu.dimension_semantics<parallel>], iteration_bounds = array<i64: 2, 1>, scalar_prefetch = 0 : i64, scratch_operands = 0 : i64, tpu.core_type = #tpu.core_type<tc>, window_params = [{pipeline_mode = #tpu.pipeline_mode<synchronous>, transform_indices = @transform_0, window_bounds = array<i64: 4, 108>}, {pipeline_mode = #tpu.pipeline_mode<synchronous>, transform_indices = @transform_1, window_bounds = array<i64: 4, 1>}, {transform_indices = @transform_2, window_bounds = array<i64: 1, 108, 256>}, {transform_indices = @transform_3, window_bounds = array<i64: 1, 4, 256>}]} {
    %c0 = arith.constant 0 : index
    %c0_0 = arith.constant 0 : index
    %0 = vector.load %arg2[%c0, %c0_0] : memref<4x108xf32, #tpu.memory_space<vmem>>, vector<4x108xf32>
    %c0_1 = arith.constant 0 : index
    %c0_2 = arith.constant 0 : index
    %c0_3 = arith.constant 0 : index
    %1 = vector.load %arg4[%c0_1, %c0_2, %c0_3] : memref<1x108x256xf32, #tpu.memory_space<vmem>>, vector<1x108x256xf32>
    %2 = vector.shape_cast %1 : vector<1x108x256xf32> to vector<108x256xf32>
    %cst = arith.constant dense<0.000000e+00> : vector<4x256xf32>
    %3 = tpu.matmul %0, %2, %cst {dimension_numbers = #tpu.dot_dimension_numbers<[1], [0], [0], [1], [0, 0, 1, 1], [], []>} : vector<4x108xf32>, vector<108x256xf32>, vector<4x256xf32> -> vector<4x256xf32>
    %c0_4 = arith.constant 0 : index
    %c0_5 = arith.constant 0 : index
    %4 = vector.load %arg3[%c0_4, %c0_5] : memref<4x1xf32, #tpu.memory_space<vmem>>, vector<4x1xf32>
    %5 = vector.broadcast %4 : vector<4x1xf32> to vector<4x256xf32>
    %6 = arith.addf %3, %5 : vector<4x256xf32>
    %cst_6 = arith.constant 2.000000e-01 : f32
    %7 = vector.broadcast %cst_6 : f32 to vector<4x256xf32>
    %8 = arith.mulf %7, %6 : vector<4x256xf32>
    %9 = arith.maximumf %6, %8 : vector<4x256xf32>
    %c0_7 = arith.constant 0 : index
    %c0_8 = arith.constant 0 : index
    %c0_9 = arith.constant 0 : index
    %10 = vector.load %arg5[%c0_7, %c0_8, %c0_9] : memref<1x4x256xf32, #tpu.memory_space<vmem>>, vector<1x4x256xf32>
    %11 = vector.shape_cast %10 : vector<1x4x256xf32> to vector<4x256xf32>
    %12 = vector.shape_cast %9 : vector<4x256xf32> to vector<1x4x256xf32>
    tpu.vector_store %arg5[%c0_7, %c0_8, %c0_9], %12 {strides = array<i32>} : memref<1x4x256xf32, #tpu.memory_space<vmem>>, vector<1x4x256xf32>,
    return
  }
  func.func @transform_0(%arg0: i32, %arg1: i32) -> (i32, i32) {
    %c0_i32 = arith.constant 0 : i32
    %c0_i32_0 = arith.constant 0 : i32
    %c0_i32_1 = arith.constant 0 : i32
    return %c0_i32, %c0_i32_0 : i32, i32
  }
  func.func @transform_1(%arg0: i32, %arg1: i32) -> (i32, i32) {
    %c0_i32 = arith.constant 0 : i32
    %c0_i32_0 = arith.constant 0 : i32
    %c0_i32_1 = arith.constant 0 : i32
    return %c0_i32, %c0_i32_0 : i32, i32
  }
  func.func @transform_2(%arg0: i32, %arg1: i32) -> (i32, i32, i32) {
    %c0_i32 = arith.constant 0 : i32
    %c0_i32_0 = arith.constant 0 : i32
    return %arg0, %c0_i32, %arg1 : i32, i32, i32
  }
  func.func @transform_3(%arg0: i32, %arg1: i32) -> (i32, i32, i32) {
    %c0_i32 = arith.constant 0 : i32
    %c0_i32_0 = arith.constant 0 : i32
    return %arg0, %c0_i32, %arg1 : i32, i32, i32
  }
}

module attributes {stable_mosaic.version = 11 : i64} {
  func.func @_mm_act_kernel(%arg0: i32, %arg1: i32, %arg2: memref<4x144xf32, #tpu.memory_space<vmem>>, %arg3: memref<4x1xf32, #tpu.memory_space<vmem>>, %arg4: memref<1x144x256xf32, #tpu.memory_space<vmem>>, %arg5: memref<1x4x256xf32, #tpu.memory_space<vmem>>) attributes {dimension_semantics = [#tpu.dimension_semantics<parallel>, #tpu.dimension_semantics<parallel>], iteration_bounds = array<i64: 2, 1>, scalar_prefetch = 0 : i64, scratch_operands = 0 : i64, tpu.core_type = #tpu.core_type<tc>, window_params = [{pipeline_mode = #tpu.pipeline_mode<synchronous>, transform_indices = @transform_0, window_bounds = array<i64: 4, 144>}, {pipeline_mode = #tpu.pipeline_mode<synchronous>, transform_indices = @transform_1, window_bounds = array<i64: 4, 1>}, {transform_indices = @transform_2, window_bounds = array<i64: 1, 144, 256>}, {transform_indices = @transform_3, window_bounds = array<i64: 1, 4, 256>}]} {
    %c0 = arith.constant 0 : index
    %c0_0 = arith.constant 0 : index
    %0 = vector.load %arg2[%c0, %c0_0] : memref<4x144xf32, #tpu.memory_space<vmem>>, vector<4x144xf32>
    %c0_1 = arith.constant 0 : index
    %c0_2 = arith.constant 0 : index
    %c0_3 = arith.constant 0 : index
    %1 = vector.load %arg4[%c0_1, %c0_2, %c0_3] : memref<1x144x256xf32, #tpu.memory_space<vmem>>, vector<1x144x256xf32>
    %2 = vector.shape_cast %1 : vector<1x144x256xf32> to vector<144x256xf32>
    %cst = arith.constant dense<0.000000e+00> : vector<4x256xf32>
    %3 = tpu.matmul %0, %2, %cst {dimension_numbers = #tpu.dot_dimension_numbers<[1], [0], [0], [1], [0, 0, 1, 1], [], []>} : vector<4x144xf32>, vector<144x256xf32>, vector<4x256xf32> -> vector<4x256xf32>
    %c0_4 = arith.constant 0 : index
    %c0_5 = arith.constant 0 : index
    %4 = vector.load %arg3[%c0_4, %c0_5] : memref<4x1xf32, #tpu.memory_space<vmem>>, vector<4x1xf32>
    %5 = vector.broadcast %4 : vector<4x1xf32> to vector<4x256xf32>
    %6 = arith.addf %3, %5 : vector<4x256xf32>
    %cst_6 = arith.constant 2.000000e-01 : f32
    %7 = vector.broadcast %cst_6 : f32 to vector<4x256xf32>
    %8 = arith.mulf %7, %6 : vector<4x256xf32>
    %9 = arith.maximumf %6, %8 : vector<4x256xf32>
    %c0_7 = arith.constant 0 : index
    %c0_8 = arith.constant 0 : index
    %c0_9 = arith.constant 0 : index
    %10 = vector.load %arg5[%c0_7, %c0_8, %c0_9] : memref<1x4x256xf32, #tpu.memory_space<vmem>>, vector<1x4x256xf32>
    %11 = vector.shape_cast %10 : vector<1x4x256xf32> to vector<4x256xf32>
    %12 = vector.shape_cast %9 : vector<4x256xf32> to vector<1x4x256xf32>
    tpu.vector_store %arg5[%c0_7, %c0_8, %c0_9], %12 {strides = array<i32>} : memref<1x4x256xf32, #tpu.memory_space<vmem>>, vector<1x4x256xf32>,
    return
  }
  func.func @transform_0(%arg0: i32, %arg1: i32) -> (i32, i32) {
    %c0_i32 = arith.constant 0 : i32
    %c0_i32_0 = arith.constant 0 : i32
    %c0_i32_1 = arith.constant 0 : i32
    return %c0_i32, %c0_i32_0 : i32, i32
  }
  func.func @transform_1(%arg0: i32, %arg1: i32) -> (i32, i32) {
    %c0_i32 = arith.constant 0 : i32
    %c0_i32_0 = arith.constant 0 : i32
    %c0_i32_1 = arith.constant 0 : i32
    return %c0_i32, %c0_i32_0 : i32, i32
  }
  func.func @transform_2(%arg0: i32, %arg1: i32) -> (i32, i32, i32) {
    %c0_i32 = arith.constant 0 : i32
    %c0_i32_0 = arith.constant 0 : i32
    return %arg0, %c0_i32, %arg1 : i32, i32, i32
  }
  func.func @transform_3(%arg0: i32, %arg1: i32) -> (i32, i32, i32) {
    %c0_i32 = arith.constant 0 : i32
    %c0_i32_0 = arith.constant 0 : i32
    return %arg0, %c0_i32, %arg1 : i32, i32, i32
  }
}

module attributes {stable_mosaic.version = 11 : i64} {
  func.func @_mm_act_kernel(%arg0: i32, %arg1: i32, %arg2: memref<4x180xf32, #tpu.memory_space<vmem>>, %arg3: memref<4x1xf32, #tpu.memory_space<vmem>>, %arg4: memref<1x180x256xf32, #tpu.memory_space<vmem>>, %arg5: memref<1x4x256xf32, #tpu.memory_space<vmem>>) attributes {dimension_semantics = [#tpu.dimension_semantics<parallel>, #tpu.dimension_semantics<parallel>], iteration_bounds = array<i64: 2, 1>, scalar_prefetch = 0 : i64, scratch_operands = 0 : i64, tpu.core_type = #tpu.core_type<tc>, window_params = [{pipeline_mode = #tpu.pipeline_mode<synchronous>, transform_indices = @transform_0, window_bounds = array<i64: 4, 180>}, {pipeline_mode = #tpu.pipeline_mode<synchronous>, transform_indices = @transform_1, window_bounds = array<i64: 4, 1>}, {transform_indices = @transform_2, window_bounds = array<i64: 1, 180, 256>}, {transform_indices = @transform_3, window_bounds = array<i64: 1, 4, 256>}]} {
    %c0 = arith.constant 0 : index
    %c0_0 = arith.constant 0 : index
    %0 = vector.load %arg2[%c0, %c0_0] : memref<4x180xf32, #tpu.memory_space<vmem>>, vector<4x180xf32>
    %c0_1 = arith.constant 0 : index
    %c0_2 = arith.constant 0 : index
    %c0_3 = arith.constant 0 : index
    %1 = vector.load %arg4[%c0_1, %c0_2, %c0_3] : memref<1x180x256xf32, #tpu.memory_space<vmem>>, vector<1x180x256xf32>
    %2 = vector.shape_cast %1 : vector<1x180x256xf32> to vector<180x256xf32>
    %cst = arith.constant dense<0.000000e+00> : vector<4x256xf32>
    %3 = tpu.matmul %0, %2, %cst {dimension_numbers = #tpu.dot_dimension_numbers<[1], [0], [0], [1], [0, 0, 1, 1], [], []>} : vector<4x180xf32>, vector<180x256xf32>, vector<4x256xf32> -> vector<4x256xf32>
    %c0_4 = arith.constant 0 : index
    %c0_5 = arith.constant 0 : index
    %4 = vector.load %arg3[%c0_4, %c0_5] : memref<4x1xf32, #tpu.memory_space<vmem>>, vector<4x1xf32>
    %5 = vector.broadcast %4 : vector<4x1xf32> to vector<4x256xf32>
    %6 = arith.addf %3, %5 : vector<4x256xf32>
    %cst_6 = arith.constant 2.000000e-01 : f32
    %7 = vector.broadcast %cst_6 : f32 to vector<4x256xf32>
    %8 = arith.mulf %7, %6 : vector<4x256xf32>
    %9 = arith.maximumf %6, %8 : vector<4x256xf32>
    %c0_7 = arith.constant 0 : index
    %c0_8 = arith.constant 0 : index
    %c0_9 = arith.constant 0 : index
    %10 = vector.load %arg5[%c0_7, %c0_8, %c0_9] : memref<1x4x256xf32, #tpu.memory_space<vmem>>, vector<1x4x256xf32>
    %11 = vector.shape_cast %10 : vector<1x4x256xf32> to vector<4x256xf32>
    %12 = vector.shape_cast %9 : vector<4x256xf32> to vector<1x4x256xf32>
    tpu.vector_store %arg5[%c0_7, %c0_8, %c0_9], %12 {strides = array<i32>} : memref<1x4x256xf32, #tpu.memory_space<vmem>>, vector<1x4x256xf32>,
    return
  }
  func.func @transform_0(%arg0: i32, %arg1: i32) -> (i32, i32) {
    %c0_i32 = arith.constant 0 : i32
    %c0_i32_0 = arith.constant 0 : i32
    %c0_i32_1 = arith.constant 0 : i32
    return %c0_i32, %c0_i32_0 : i32, i32
  }
  func.func @transform_1(%arg0: i32, %arg1: i32) -> (i32, i32) {
    %c0_i32 = arith.constant 0 : i32
    %c0_i32_0 = arith.constant 0 : i32
    %c0_i32_1 = arith.constant 0 : i32
    return %c0_i32, %c0_i32_0 : i32, i32
  }
  func.func @transform_2(%arg0: i32, %arg1: i32) -> (i32, i32, i32) {
    %c0_i32 = arith.constant 0 : i32
    %c0_i32_0 = arith.constant 0 : i32
    return %arg0, %c0_i32, %arg1 : i32, i32, i32
  }
  func.func @transform_3(%arg0: i32, %arg1: i32) -> (i32, i32, i32) {
    %c0_i32 = arith.constant 0 : i32
    %c0_i32_0 = arith.constant 0 : i32
    return %arg0, %c0_i32, %arg1 : i32, i32, i32
  }
}

module attributes {stable_mosaic.version = 11 : i64} {
  func.func @_mm_res_kernel(%arg0: i32, %arg1: i32, %arg2: memref<8x216xf32, #tpu.memory_space<vmem>>, %arg3: memref<8x1xf32, #tpu.memory_space<vmem>>, %arg4: memref<1x216x256xf32, #tpu.memory_space<vmem>>, %arg5: memref<1x8x256xf32, #tpu.memory_space<vmem>>, %arg6: memref<1x8x256xf32, #tpu.memory_space<vmem>>) attributes {dimension_semantics = [#tpu.dimension_semantics<parallel>, #tpu.dimension_semantics<parallel>], iteration_bounds = array<i64: 2, 1>, scalar_prefetch = 0 : i64, scratch_operands = 0 : i64, tpu.core_type = #tpu.core_type<tc>, window_params = [{pipeline_mode = #tpu.pipeline_mode<synchronous>, transform_indices = @transform_0, window_bounds = array<i64: 8, 216>}, {pipeline_mode = #tpu.pipeline_mode<synchronous>, transform_indices = @transform_1, window_bounds = array<i64: 8, 1>}, {transform_indices = @transform_2, window_bounds = array<i64: 1, 216, 256>}, {transform_indices = @transform_3, window_bounds = array<i64: 1, 8, 256>}, {transform_indices = @transform_4, window_bounds = array<i64: 1, 8, 256>}]} {
    %c0 = arith.constant 0 : index
    %c0_0 = arith.constant 0 : index
    %0 = vector.load %arg2[%c0, %c0_0] : memref<8x216xf32, #tpu.memory_space<vmem>>, vector<8x216xf32>
    %c0_1 = arith.constant 0 : index
    %c0_2 = arith.constant 0 : index
    %c0_3 = arith.constant 0 : index
    %1 = vector.load %arg4[%c0_1, %c0_2, %c0_3] : memref<1x216x256xf32, #tpu.memory_space<vmem>>, vector<1x216x256xf32>
    %2 = vector.shape_cast %1 : vector<1x216x256xf32> to vector<216x256xf32>
    %cst = arith.constant dense<0.000000e+00> : vector<8x256xf32>
    %3 = tpu.matmul %0, %2, %cst {dimension_numbers = #tpu.dot_dimension_numbers<[1], [0], [0], [1], [0, 0, 1, 1], [], []>} : vector<8x216xf32>, vector<216x256xf32>, vector<8x256xf32> -> vector<8x256xf32>
    %c0_4 = arith.constant 0 : index
    %c0_5 = arith.constant 0 : index
    %4 = vector.load %arg3[%c0_4, %c0_5] : memref<8x1xf32, #tpu.memory_space<vmem>>, vector<8x1xf32>
    %5 = vector.broadcast %4 : vector<8x1xf32> to vector<8x256xf32>
    %6 = arith.addf %3, %5 : vector<8x256xf32>
    %cst_6 = arith.constant 2.000000e-01 : f32
    %7 = vector.broadcast %cst_6 : f32 to vector<8x256xf32>
    %8 = arith.mulf %6, %7 : vector<8x256xf32>
    %c0_7 = arith.constant 0 : index
    %c0_8 = arith.constant 0 : index
    %c0_9 = arith.constant 0 : index
    %9 = vector.load %arg5[%c0_7, %c0_8, %c0_9] : memref<1x8x256xf32, #tpu.memory_space<vmem>>, vector<1x8x256xf32>
    %10 = vector.shape_cast %9 : vector<1x8x256xf32> to vector<8x256xf32>
    %11 = arith.addf %8, %10 : vector<8x256xf32>
    %cst_10 = arith.constant 0.000000e+00 : f32
    %12 = vector.broadcast %cst_10 : f32 to vector<8x256xf32>
    %13 = arith.maximumf %11, %12 : vector<8x256xf32>
    %c0_11 = arith.constant 0 : index
    %c0_12 = arith.constant 0 : index
    %c0_13 = arith.constant 0 : index
    %14 = vector.load %arg6[%c0_11, %c0_12, %c0_13] : memref<1x8x256xf32, #tpu.memory_space<vmem>>, vector<1x8x256xf32>
    %15 = vector.shape_cast %14 : vector<1x8x256xf32> to vector<8x256xf32>
    %16 = vector.shape_cast %13 : vector<8x256xf32> to vector<1x8x256xf32>
    tpu.vector_store %arg6[%c0_11, %c0_12, %c0_13], %16 {strides = array<i32>} : memref<1x8x256xf32, #tpu.memory_space<vmem>>, vector<1x8x256xf32>,
    return
  }
  func.func @transform_0(%arg0: i32, %arg1: i32) -> (i32, i32) {
    %c0_i32 = arith.constant 0 : i32
    %c0_i32_0 = arith.constant 0 : i32
    %c0_i32_1 = arith.constant 0 : i32
    return %c0_i32, %c0_i32_0 : i32, i32
  }
  func.func @transform_1(%arg0: i32, %arg1: i32) -> (i32, i32) {
    %c0_i32 = arith.constant 0 : i32
    %c0_i32_0 = arith.constant 0 : i32
    %c0_i32_1 = arith.constant 0 : i32
    return %c0_i32, %c0_i32_0 : i32, i32
  }
  func.func @transform_2(%arg0: i32, %arg1: i32) -> (i32, i32, i32) {
    %c0_i32 = arith.constant 0 : i32
    %c0_i32_0 = arith.constant 0 : i32
    return %arg0, %c0_i32, %arg1 : i32, i32, i32
  }
  func.func @transform_3(%arg0: i32, %arg1: i32) -> (i32, i32, i32) {
    %c0_i32 = arith.constant 0 : i32
    %c0_i32_0 = arith.constant 0 : i32
    return %arg0, %c0_i32, %arg1 : i32, i32, i32
  }
  func.func @transform_4(%arg0: i32, %arg1: i32) -> (i32, i32, i32) {
    %c0_i32 = arith.constant 0 : i32
    %c0_i32_0 = arith.constant 0 : i32
    return %arg0, %c0_i32, %arg1 : i32, i32, i32
  }
}

module attributes {stable_mosaic.version = 11 : i64} {
  func.func @_mm_res_kernel(%arg0: i32, %arg1: i32, %arg2: memref<8x24xf32, #tpu.memory_space<vmem>>, %arg3: memref<8x1xf32, #tpu.memory_space<vmem>>, %arg4: memref<1x24x256xf32, #tpu.memory_space<vmem>>, %arg5: memref<1x8x256xf32, #tpu.memory_space<vmem>>, %arg6: memref<1x8x256xf32, #tpu.memory_space<vmem>>) attributes {dimension_semantics = [#tpu.dimension_semantics<parallel>, #tpu.dimension_semantics<parallel>], iteration_bounds = array<i64: 2, 1>, scalar_prefetch = 0 : i64, scratch_operands = 0 : i64, tpu.core_type = #tpu.core_type<tc>, window_params = [{pipeline_mode = #tpu.pipeline_mode<synchronous>, transform_indices = @transform_0, window_bounds = array<i64: 8, 24>}, {pipeline_mode = #tpu.pipeline_mode<synchronous>, transform_indices = @transform_1, window_bounds = array<i64: 8, 1>}, {transform_indices = @transform_2, window_bounds = array<i64: 1, 24, 256>}, {transform_indices = @transform_3, window_bounds = array<i64: 1, 8, 256>}, {transform_indices = @transform_4, window_bounds = array<i64: 1, 8, 256>}]} {
    %c0 = arith.constant 0 : index
    %c0_0 = arith.constant 0 : index
    %0 = vector.load %arg2[%c0, %c0_0] : memref<8x24xf32, #tpu.memory_space<vmem>>, vector<8x24xf32>
    %c0_1 = arith.constant 0 : index
    %c0_2 = arith.constant 0 : index
    %c0_3 = arith.constant 0 : index
    %1 = vector.load %arg4[%c0_1, %c0_2, %c0_3] : memref<1x24x256xf32, #tpu.memory_space<vmem>>, vector<1x24x256xf32>
    %2 = vector.shape_cast %1 : vector<1x24x256xf32> to vector<24x256xf32>
    %cst = arith.constant dense<0.000000e+00> : vector<8x256xf32>
    %3 = tpu.matmul %0, %2, %cst {dimension_numbers = #tpu.dot_dimension_numbers<[1], [0], [0], [1], [0, 0, 1, 1], [], []>} : vector<8x24xf32>, vector<24x256xf32>, vector<8x256xf32> -> vector<8x256xf32>
    %c0_4 = arith.constant 0 : index
    %c0_5 = arith.constant 0 : index
    %4 = vector.load %arg3[%c0_4, %c0_5] : memref<8x1xf32, #tpu.memory_space<vmem>>, vector<8x1xf32>
    %5 = vector.broadcast %4 : vector<8x1xf32> to vector<8x256xf32>
    %6 = arith.addf %3, %5 : vector<8x256xf32>
    %cst_6 = arith.constant 2.000000e-01 : f32
    %7 = vector.broadcast %cst_6 : f32 to vector<8x256xf32>
    %8 = arith.mulf %6, %7 : vector<8x256xf32>
    %c0_7 = arith.constant 0 : index
    %c0_8 = arith.constant 0 : index
    %c0_9 = arith.constant 0 : index
    %9 = vector.load %arg5[%c0_7, %c0_8, %c0_9] : memref<1x8x256xf32, #tpu.memory_space<vmem>>, vector<1x8x256xf32>
    %10 = vector.shape_cast %9 : vector<1x8x256xf32> to vector<8x256xf32>
    %11 = arith.addf %8, %10 : vector<8x256xf32>
    %c0_10 = arith.constant 0 : index
    %c0_11 = arith.constant 0 : index
    %c0_12 = arith.constant 0 : index
    %12 = vector.load %arg6[%c0_10, %c0_11, %c0_12] : memref<1x8x256xf32, #tpu.memory_space<vmem>>, vector<1x8x256xf32>
    %13 = vector.shape_cast %12 : vector<1x8x256xf32> to vector<8x256xf32>
    %14 = vector.shape_cast %11 : vector<8x256xf32> to vector<1x8x256xf32>
    tpu.vector_store %arg6[%c0_10, %c0_11, %c0_12], %14 {strides = array<i32>} : memref<1x8x256xf32, #tpu.memory_space<vmem>>, vector<1x8x256xf32>,
    return
  }
  func.func @transform_0(%arg0: i32, %arg1: i32) -> (i32, i32) {
    %c0_i32 = arith.constant 0 : i32
    %c0_i32_0 = arith.constant 0 : i32
    %c0_i32_1 = arith.constant 0 : i32
    return %c0_i32, %c0_i32_0 : i32, i32
  }
  func.func @transform_1(%arg0: i32, %arg1: i32) -> (i32, i32) {
    %c0_i32 = arith.constant 0 : i32
    %c0_i32_0 = arith.constant 0 : i32
    %c0_i32_1 = arith.constant 0 : i32
    return %c0_i32, %c0_i32_0 : i32, i32
  }
  func.func @transform_2(%arg0: i32, %arg1: i32) -> (i32, i32, i32) {
    %c0_i32 = arith.constant 0 : i32
    %c0_i32_0 = arith.constant 0 : i32
    return %arg0, %c0_i32, %arg1 : i32, i32, i32
  }
  func.func @transform_3(%arg0: i32, %arg1: i32) -> (i32, i32, i32) {
    %c0_i32 = arith.constant 0 : i32
    %c0_i32_0 = arith.constant 0 : i32
    return %arg0, %c0_i32, %arg1 : i32, i32, i32
  }
  func.func @transform_4(%arg0: i32, %arg1: i32) -> (i32, i32, i32) {
    %c0_i32 = arith.constant 0 : i32
    %c0_i32_0 = arith.constant 0 : i32
    return %arg0, %c0_i32, %arg1 : i32, i32, i32
  }
}

module attributes {stable_mosaic.version = 11 : i64} {
  func.func @_mm_res_kernel(%arg0: i32, %arg1: i32, %arg2: memref<8x24xf32, #tpu.memory_space<vmem>>, %arg3: memref<8x1xf32, #tpu.memory_space<vmem>>, %arg4: memref<1x24x256xf32, #tpu.memory_space<vmem>>, %arg5: memref<1x8x256xf32, #tpu.memory_space<vmem>>, %arg6: memref<1x8x256xf32, #tpu.memory_space<vmem>>) attributes {dimension_semantics = [#tpu.dimension_semantics<parallel>, #tpu.dimension_semantics<parallel>], iteration_bounds = array<i64: 2, 1>, scalar_prefetch = 0 : i64, scratch_operands = 0 : i64, tpu.core_type = #tpu.core_type<tc>, window_params = [{pipeline_mode = #tpu.pipeline_mode<synchronous>, transform_indices = @transform_0, window_bounds = array<i64: 8, 24>}, {pipeline_mode = #tpu.pipeline_mode<synchronous>, transform_indices = @transform_1, window_bounds = array<i64: 8, 1>}, {transform_indices = @transform_2, window_bounds = array<i64: 1, 24, 256>}, {transform_indices = @transform_3, window_bounds = array<i64: 1, 8, 256>}, {transform_indices = @transform_4, window_bounds = array<i64: 1, 8, 256>}]} {
    %c0 = arith.constant 0 : index
    %c0_0 = arith.constant 0 : index
    %0 = vector.load %arg2[%c0, %c0_0] : memref<8x24xf32, #tpu.memory_space<vmem>>, vector<8x24xf32>
    %c0_1 = arith.constant 0 : index
    %c0_2 = arith.constant 0 : index
    %c0_3 = arith.constant 0 : index
    %1 = vector.load %arg4[%c0_1, %c0_2, %c0_3] : memref<1x24x256xf32, #tpu.memory_space<vmem>>, vector<1x24x256xf32>
    %2 = vector.shape_cast %1 : vector<1x24x256xf32> to vector<24x256xf32>
    %cst = arith.constant dense<0.000000e+00> : vector<8x256xf32>
    %3 = tpu.matmul %0, %2, %cst {dimension_numbers = #tpu.dot_dimension_numbers<[1], [0], [0], [1], [0, 0, 1, 1], [], []>} : vector<8x24xf32>, vector<24x256xf32>, vector<8x256xf32> -> vector<8x256xf32>
    %c0_4 = arith.constant 0 : index
    %c0_5 = arith.constant 0 : index
    %4 = vector.load %arg3[%c0_4, %c0_5] : memref<8x1xf32, #tpu.memory_space<vmem>>, vector<8x1xf32>
    %5 = vector.broadcast %4 : vector<8x1xf32> to vector<8x256xf32>
    %6 = arith.addf %3, %5 : vector<8x256xf32>
    %cst_6 = arith.constant 2.000000e-01 : f32
    %7 = vector.broadcast %cst_6 : f32 to vector<8x256xf32>
    %8 = arith.mulf %6, %7 : vector<8x256xf32>
    %c0_7 = arith.constant 0 : index
    %c0_8 = arith.constant 0 : index
    %c0_9 = arith.constant 0 : index
    %9 = vector.load %arg5[%c0_7, %c0_8, %c0_9] : memref<1x8x256xf32, #tpu.memory_space<vmem>>, vector<1x8x256xf32>
    %10 = vector.shape_cast %9 : vector<1x8x256xf32> to vector<8x256xf32>
    %11 = arith.addf %8, %10 : vector<8x256xf32>
    %cst_10 = arith.constant 0.000000e+00 : f32
    %12 = vector.broadcast %cst_10 : f32 to vector<8x256xf32>
    %13 = arith.maximumf %11, %12 : vector<8x256xf32>
    %c0_11 = arith.constant 0 : index
    %c0_12 = arith.constant 0 : index
    %c0_13 = arith.constant 0 : index
    %14 = vector.load %arg6[%c0_11, %c0_12, %c0_13] : memref<1x8x256xf32, #tpu.memory_space<vmem>>, vector<1x8x256xf32>
    %15 = vector.shape_cast %14 : vector<1x8x256xf32> to vector<8x256xf32>
    %16 = vector.shape_cast %13 : vector<8x256xf32> to vector<1x8x256xf32>
    tpu.vector_store %arg6[%c0_11, %c0_12, %c0_13], %16 {strides = array<i32>} : memref<1x8x256xf32, #tpu.memory_space<vmem>>, vector<1x8x256xf32>,
    return
  }
  func.func @transform_0(%arg0: i32, %arg1: i32) -> (i32, i32) {
    %c0_i32 = arith.constant 0 : i32
    %c0_i32_0 = arith.constant 0 : i32
    %c0_i32_1 = arith.constant 0 : i32
    return %c0_i32, %c0_i32_0 : i32, i32
  }
  func.func @transform_1(%arg0: i32, %arg1: i32) -> (i32, i32) {
    %c0_i32 = arith.constant 0 : i32
    %c0_i32_0 = arith.constant 0 : i32
    %c0_i32_1 = arith.constant 0 : i32
    return %c0_i32, %c0_i32_0 : i32, i32
  }
  func.func @transform_2(%arg0: i32, %arg1: i32) -> (i32, i32, i32) {
    %c0_i32 = arith.constant 0 : i32
    %c0_i32_0 = arith.constant 0 : i32
    return %arg0, %c0_i32, %arg1 : i32, i32, i32
  }
  func.func @transform_3(%arg0: i32, %arg1: i32) -> (i32, i32, i32) {
    %c0_i32 = arith.constant 0 : i32
    %c0_i32_0 = arith.constant 0 : i32
    return %arg0, %c0_i32, %arg1 : i32, i32, i32
  }
  func.func @transform_4(%arg0: i32, %arg1: i32) -> (i32, i32, i32) {
    %c0_i32 = arith.constant 0 : i32
    %c0_i32_0 = arith.constant 0 : i32
    return %arg0, %c0_i32, %arg1 : i32, i32, i32
  }
}

module attributes {stable_mosaic.version = 11 : i64} {
  func.func @_head_kernel(%arg0: i32, %arg1: i32, %arg2: memref<3x24xf32, #tpu.memory_space<vmem>>, %arg3: memref<3x1xf32, #tpu.memory_space<vmem>>, %arg4: memref<1x24x256xf32, #tpu.memory_space<vmem>>, %arg5: memref<1x3x256xf32, #tpu.memory_space<vmem>>, %arg6: memref<1x3x256xf32, #tpu.memory_space<vmem>>) attributes {dimension_semantics = [#tpu.dimension_semantics<parallel>, #tpu.dimension_semantics<parallel>], iteration_bounds = array<i64: 2, 1>, scalar_prefetch = 0 : i64, scratch_operands = 0 : i64, tpu.core_type = #tpu.core_type<tc>, window_params = [{pipeline_mode = #tpu.pipeline_mode<synchronous>, transform_indices = @transform_0, window_bounds = array<i64: 3, 24>}, {pipeline_mode = #tpu.pipeline_mode<synchronous>, transform_indices = @transform_1, window_bounds = array<i64: 3, 1>}, {transform_indices = @transform_2, window_bounds = array<i64: 1, 24, 256>}, {transform_indices = @transform_3, window_bounds = array<i64: 1, 3, 256>}, {transform_indices = @transform_4, window_bounds = array<i64: 1, 3, 256>}]} {
    %c0 = arith.constant 0 : index
    %c0_0 = arith.constant 0 : index
    %c0_1 = arith.constant 0 : index
    %0 = vector.load %arg4[%c0, %c0_0, %c0_1] : memref<1x24x256xf32, #tpu.memory_space<vmem>>, vector<1x24x256xf32>
    %1 = vector.shape_cast %0 : vector<1x24x256xf32> to vector<24x256xf32>
    %cst = arith.constant 0.000000e+00 : f32
    %2 = vector.broadcast %cst : f32 to vector<24x256xf32>
    %3 = arith.maximumf %1, %2 : vector<24x256xf32>
    %c0_2 = arith.constant 0 : index
    %c0_3 = arith.constant 0 : index
    %4 = vector.load %arg2[%c0_2, %c0_3] : memref<3x24xf32, #tpu.memory_space<vmem>>, vector<3x24xf32>
    %cst_4 = arith.constant dense<0.000000e+00> : vector<3x256xf32>
    %5 = tpu.matmul %4, %3, %cst_4 {dimension_numbers = #tpu.dot_dimension_numbers<[1], [0], [0], [1], [0, 0, 1, 1], [], []>} : vector<3x24xf32>, vector<24x256xf32>, vector<3x256xf32> -> vector<3x256xf32>
    %c0_5 = arith.constant 0 : index
    %c0_6 = arith.constant 0 : index
    %6 = vector.load %arg3[%c0_5, %c0_6] : memref<3x1xf32, #tpu.memory_space<vmem>>, vector<3x1xf32>
    %7 = vector.broadcast %6 : vector<3x1xf32> to vector<3x256xf32>
    %8 = arith.addf %5, %7 : vector<3x256xf32>
    %c0_7 = arith.constant 0 : index
    %c0_8 = arith.constant 0 : index
    %c0_9 = arith.constant 0 : index
    %9 = vector.load %arg5[%c0_7, %c0_8, %c0_9] : memref<1x3x256xf32, #tpu.memory_space<vmem>>, vector<1x3x256xf32>
    %10 = vector.shape_cast %9 : vector<1x3x256xf32> to vector<3x256xf32>
    %11 = arith.addf %8, %10 : vector<3x256xf32>
    %12 = math.tanh %11 : vector<3x256xf32>
    %cst_10 = arith.constant 1.000000e+00 : f32
    %13 = vector.broadcast %cst_10 : f32 to vector<3x256xf32>
    %14 = arith.addf %12, %13 : vector<3x256xf32>
    %cst_11 = arith.constant 5.000000e-01 : f32
    %15 = vector.broadcast %cst_11 : f32 to vector<3x256xf32>
    %16 = arith.mulf %14, %15 : vector<3x256xf32>
    %cst_12 = arith.constant 0.000000e+00 : f32
    %cst_13 = arith.constant 1.000000e+00 : f32
    %17 = vector.broadcast %cst_12 : f32 to vector<3x256xf32>
    %18 = arith.maximumf %17, %16 : vector<3x256xf32>
    %19 = vector.broadcast %cst_13 : f32 to vector<3x256xf32>
    %20 = arith.minimumf %19, %18 : vector<3x256xf32>
    %c0_14 = arith.constant 0 : index
    %c0_15 = arith.constant 0 : index
    %c0_16 = arith.constant 0 : index
    %21 = vector.load %arg6[%c0_14, %c0_15, %c0_16] : memref<1x3x256xf32, #tpu.memory_space<vmem>>, vector<1x3x256xf32>
    %22 = vector.shape_cast %21 : vector<1x3x256xf32> to vector<3x256xf32>
    %23 = vector.shape_cast %20 : vector<3x256xf32> to vector<1x3x256xf32>
    tpu.vector_store %arg6[%c0_14, %c0_15, %c0_16], %23 {strides = array<i32>} : memref<1x3x256xf32, #tpu.memory_space<vmem>>, vector<1x3x256xf32>,
    return
  }
  func.func @transform_0(%arg0: i32, %arg1: i32) -> (i32, i32) {
    %c0_i32 = arith.constant 0 : i32
    %c0_i32_0 = arith.constant 0 : i32
    %c0_i32_1 = arith.constant 0 : i32
    return %c0_i32, %c0_i32_0 : i32, i32
  }
  func.func @transform_1(%arg0: i32, %arg1: i32) -> (i32, i32) {
    %c0_i32 = arith.constant 0 : i32
    %c0_i32_0 = arith.constant 0 : i32
    %c0_i32_1 = arith.constant 0 : i32
    return %c0_i32, %c0_i32_0 : i32, i32
  }
  func.func @transform_2(%arg0: i32, %arg1: i32) -> (i32, i32, i32) {
    %c0_i32 = arith.constant 0 : i32
    %c0_i32_0 = arith.constant 0 : i32
    return %arg0, %c0_i32, %arg1 : i32, i32, i32
  }
  func.func @transform_3(%arg0: i32, %arg1: i32) -> (i32, i32, i32) {
    %c0_i32 = arith.constant 0 : i32
    %c0_i32_0 = arith.constant 0 : i32
    return %arg0, %c0_i32, %arg1 : i32, i32, i32
  }
  func.func @transform_4(%arg0: i32, %arg1: i32) -> (i32, i32, i32) {
    %c0_i32 = arith.constant 0 : i32
    %c0_i32_0 = arith.constant 0 : i32
    return %arg0, %c0_i32, %arg1 : i32, i32, i32
  }
}

</mosaic_0001>

<bundles_post_ra>
// kernel: generator_forward.53
= control target key start
LH: loop header
LB: loop body
LE: loop exit
PB: predicated region body
PF: predicated region fallthrough
CT: control target
= control target key end

     0   :  { %s481_s12 = smov 0   ;;  %s483_s13 = smov 0   ;;  %s520_s0 = inlined_call_operand.vmem [shape: f32[8,3], index: 0, kind: input, shape index: {}]   ;;  %s521_s1 = inlined_call_operand.vmem [shape: f32[8,1], index: 1, kind: input, shape index: {}]   ;;  %s522_s2 = inlined_call_operand.vmem [shape: f32[2,3,256], index: 2, kind: input, shape index: {}]   ;;  %s523_s3 = inlined_call_operand.vmem [shape: f32[2,8,256], index: 3, kind: output, shape index: {}]  }
   0x1   :  { %s485_s14 = smov 0  }
   0x2 LB: > { %s25_s15 = sadd.s32 1, %s453_s13  ;;  %p395_p0 = scmp.ge.s32.totalorder %s457_s14, 1  ;;  %s457_s14 = sphi %s485_s14, %s13_s14   ;;  %s453_s13 = sphi %s483_s13, %s525_s13   ;;  %s449_s12 = sphi %s481_s12, %s524_s12  }
   0x3   : > { %p27_p1 = scmp.ge.s32.totalorder %s25_s15, 2  ;;  %p158_p2 = scmp.lt.s32.totalorder %s457_s14, 3 }
   0x5   : > { %s527_s15 = smov (%p27_p1, %s25_s15), 0  ;;  %p159_p3 = pnand %p395_p0, %p158_p2 }
   0x6   : > { %p191_p4 = scmp.lt.s32.totalorder (!%p159_p3), %s449_s12, 1  ;;  %v459_v0 = vmov (!%p159_p3), 0.0   ;;  %v460_v1 = vmov (!%p159_p3), 0   ;;  %v212_v2 = vld [vmem:[%s521_s1] sm:$0xff] (!%p159_p3)  ;;  %vm224_vm0 = vcmask (!%p159_p3), 1042432   ;;  %vm220_vm1 = vcmask (!%p159_p3), 23552  }
   0x7   : > { %162 = sbr.rel (%p159_p3) target bundleno = 240 (0xf0), region = 32  ;;  %293 = vmatprep.mubr.f32.mxu0 (!%p159_p3), %v459_v0  ;;  %433 = vset.pattern.permute.xlu0 (!%p159_p3), %v460_v1  ;;  %v210_v5 = vld [vmem:[%s520_s0] sm:$0xff] (!%p159_p3) }
   0x8   : > { %215 = vperm.xlu0 (!%p159_p3), %433, %v212_v2  }
   0xe   : > { %s529_s12 = smov (!%p191_p4, %s449_s12), 1 }
   0xf   : > { %s405_s18 = sshll.u32 %s529_s12, 3  ;;  %s406_s24 = sshll.u32 %s529_s12, 4 }
  0x10   : > { %s198_s21 = scalar_lea.vmem %s522_s2, %s405_s18  ;;  %s208_s27 = scalar_lea.vmem %s523_s3, %s406_s24 }
  0x11   : > { %v211_v3 = vld [vmem:[%s198_s21] sm:$0x77] }
  0x12   : > { %v219_v4 = vcombine.high %v211_v3, %v211_v3 }
  0x14   : > { %400 = vmatprep.subr.msk.mxu0 %vm224_vm0, %v219_v4 }
  0x15   : > { %401 = vmatpush1.msk.msra.mxu0 %vm224_vm0, %v211_v3 }
  0x16   : > { %402 = vmatmul.mubr.msk.f32.vlgmr.msra.gmra.mrb[0].mxu0 %vm220_vm1, %v210_v5 }
  0x87   : > { %v216_v6 = vpop.permute.xlu0 %215 }
  0xe9   : > { %v295_v7 = vpop.f32.mrb[0].mxu0 }
  0xea   : > { %v296_v8 = vadd.f32 %v295_v7, %v216_v6  ;;  %v297_v9 = vpop.f32.mrb[1].mxu0 }
  0xeb   : > { %v298_v10 = vadd.f32 %v297_v9, %v216_v6 }
  0xec   : > { %v300_v11 = vmax.f32 %v296_v8, 0.0 }
  0xed   : > { %v301_v12 = vmax.f32 %v298_v10, 0.0 }
  0xee   : > { %302 = vst [vmem:[%s208_s27] sm:$0xff] %v300_v11 }
  0xef   : > { %303 = vst [vmem:[%s208_s27 + $0x8] sm:$0xff] %v301_v12 }
  0xf0 PF: > { %s13_s14 = sadd.s32 1, %s457_s14   ;;  %s524_s12 = smov %s453_s13 }
  0xf1   : > { %p10_p5 = scmp.ge.s32.totalorder %s13_s14, 4   ;;  %s525_s13 = smov %s527_s15 }
  0xf3   :  { %12 = sbr.rel (!%p10_p5) target bundleno = 2 (0x2), region = 62 }

// kernel: generator_forward.52
= control target key start
LH: loop header
LB: loop body
LE: loop exit
PB: predicated region body
PF: predicated region fallthrough
CT: control target
= control target key end

     0   :  { %s202_s6 = smov 0   ;;  %s222_s0 = inlined_call_operand.vmem [shape: f32[2,3,256], index: 0, kind: input, shape index: {}]   ;;  %s223_s1 = inlined_call_operand.vmem [shape: f32[2,3,256], index: 1, kind: output, shape index: {}]  }
   0x1 LB: > { %s176_s7 = sadd.s32 4294967295, %s204_s6   ;;  %p180_p0 = scmp.ge.s32.totalorder %s204_s6, 1  ;;  %s204_s6 = sphi %s202_s6, %s11_s6  }
   0x2   : > { %p87_p1 = scmp.lt.s32.totalorder %s204_s6, 3 }
   0x4   : > { %p88_p2 = pnand %p180_p0, %p87_p1 }
   0x5   : > { %p107_p3 = scmp.lt.s32.totalorder (!%p88_p2), %s176_s7, 1 }
   0x6   : > { %91 = sbr.rel (%p88_p2) target bundleno = 22 (0x16), region = 24 }
   0xd   : > { %s225_s7 = smov (!%p107_p3, %s176_s7), 1 }
   0xe   : > { %s188_s8 = sshll.u32 %s225_s7, 3 }
   0xf   : > { %s111_s11 = scalar_lea.vmem %s222_s0, %s188_s8  ;;  %s116_s14 = scalar_lea.vmem %s223_s1, %s188_s8 }
  0x10   : > { %v117_v0 = vld [vmem:[%s111_s11] sm:$0x77] }
  0x11   : > { %v118_v1 = vmul.f32 2.0, %v117_v0 }
  0x13   : > { %v185_v2 = vadd.f32 -1.0, %v118_v1 }
  0x15   : > { %120 = vst [vmem:[%s116_s14] sm:$0x77] %v185_v2 }
  0x16 PF: > { %s11_s6 = sadd.s32 1, %s204_s6  }
  0x17   : > { %p8_p4 = scmp.ge.s32.totalorder %s11_s6, 4  }
  0x19   :  { %10 = sbr.rel (!%p8_p4) target bundleno = 1 (0x1), region = 54 }

// kernel: generator_forward.54
= control target key start
LH: loop header
LB: loop body
LE: loop exit
PB: predicated region body
PF: predicated region fallthrough
CT: control target
= control target key end

     0   :  { %s479_s12 = smov 0   ;;  %s509_s0 = inlined_call_operand.vmem [shape: f32[2,8], index: 0, kind: input, shape index: {}]   ;;  %s510_s1 = inlined_call_operand.vmem [shape: f32[8,2], index: 1, kind: input, shape index: {}]   ;;  %s511_s2 = inlined_call_operand.vmem [shape: f32[2,8,256], index: 2, kind: input, shape index: {}]   ;;  %s512_s3 = inlined_call_operand.vmem [shape: f32[2,8,256], index: 3, kind: output, shape index: {}]  }
   0x1 LB: > { %s402_s13 = sadd.s32 4294967295, %s454_s12   ;;  %p406_p0 = scmp.ge.s32.totalorder %s454_s12, 1  ;;  %s454_s12 = sphi %s479_s12, %s13_s12  }
   0x2   : > { %p137_p1 = scmp.lt.s32.totalorder %s454_s12, 3 }
   0x4   : > { %p138_p2 = pnand %p406_p0, %p137_p1 }
   0x5   : > { %p161_p3 = scmp.lt.s32.totalorder (!%p138_p2), %s402_s13, 1  ;;  %v456_v3 = vmov (!%p138_p2), 0.0   ;;  %vm457_vm0 = vmmov (!%p138_p2), 0   ;;  %v177_v6 = vld [vmem:[%s509_s0] sm:$0x3] (!%p138_p2)  ;;  %vm178_vm1 = vcmask (!%p138_p2), 64512  }
   0x6   : > { %141 = sbr.rel (%p138_p2) target bundleno = 750 (0x2ee), region = 32  ;;  %422 = vmatprep.subr.mxu0 (!%p138_p2), %v456_v3  ;;  %427 = vmatprep.subr.mxu1 (!%p138_p2), %v456_v3  ;;  %vm258_vm2 = vcmask (!%p138_p2), 1041408   ;;  %v253_v10 = vld [vmem:[%s510_s1] sm:$0xff] (!%p138_p2)  ;;  %vm254_vm3 = vcmask (!%p138_p2), 15360   ;;  %v458_v11 = vmov (!%p138_p2), 0  }
   0x7   : > { %424 = vmatprep.mubr.msk.f32.mxu0 (!%p138_p2), %vm457_vm0, %v456_v3  ;;  %429 = vmatprep.mubr.msk.f32.mxu1 (!%p138_p2), %vm457_vm0, %v456_v3 }
   0x8   : > { %443 = vset.pattern.permute.xlu0 (!%p138_p2), %v458_v11 }
   0xd   : > { %s514_s13 = smov (!%p161_p3, %s402_s13), 1 }
   0xe   : > { %s416_s14 = sshll.u32 %s514_s13, 4 }
   0xf   : > { %s165_s17 = scalar_lea.vmem %s511_s2, %s416_s14  ;;  %s170_s24 = scalar_lea.vmem %s512_s3, %s416_s14 }
  0x10   : > { %v171_v0 = vld [vmem:[%s165_s17] sm:$0xff]  ;;  %v172_v1 = vld [vmem:[%s165_s17 + $0x8] sm:$0xff] }
  0x11   : > { %v173_v2 = vadd.f32 %v172_v1, %v171_v0 }
  0x13   : > { %174 = vadd.xlane.f32.xlu0 %v173_v2 }
  0xa0   : > { %v175_v4 = vpop.xlane.xlu0 %174 }
  0xa1   : > { %v176_v5 = vmul.f32 0.00390625, %v175_v4 }
  0xa3   : > { %423 = vmatpush3.msra.mxu0 %v176_v5 }
  0xa4   : > { %425 = vmatmul.mubr.msk.f32.vlgmr.msra.gmra.mrb[0].mxu0 %vm178_vm1, %v177_v6 }
 0x177   : > { %v248_v7 = vpop.f32.mrb[0].mxu0 }
 0x178   : > { %v252_v8 = vmax.f32 %v248_v7, 0.0  ;;  %v426_v9 = vpop.f32.mrb[1].mxu0 }
 0x17a   : > { %428 = vmatpush3.msk.msra.mxu1 %vm258_vm2, %v252_v8 }
 0x17b   : > { %430 = vmatmul.mubr.msk.f32.vlgmr.msra.gmra.mrb[0].mxu1 %vm254_vm3, %v253_v10 }
 0x24e   : > { %v328_v12 = vpop.f32.mrb[0].mxu1 }
 0x24f   : > { %v332_v13 = vsub.f32 0.0, %v328_v12  ;;  %v431_v14 = vpop.f32.mrb[1].mxu1 }
 0x251   : > { %v333_v15 = vmul.f32 1.442695, %v332_v13 }
 0x253   : > { %444 = vpow2.f32 %v333_v15 }
 0x25d   : > { %v445_v16 = vpop.eup %444 }
 0x25e   : > { %v335_v17 = vadd.f32 1.0, %v445_v16 }
 0x260   : > { %446 = vrcp.f32 %v335_v17 }
 0x26a   : > { %v447_v18 = vpop.eup %446 }
 0x26b   : > { %340 = vperm.xlu0 %443, %v447_v18  }
 0x2ea   : > { %v341_v19 = vpop.permute.xlu0 %340 }
 0x2eb   : > { %v343_v20 = vmul.f32 %v341_v19, %v171_v0  ;;  %v344_v21 = vmul.f32 %v341_v19, %v172_v1 }
 0x2ed   : > { %345 = vst [vmem:[%s170_s24] sm:$0xff] %v343_v20  ;;  %346 = vst [vmem:[%s170_s24 + $0x8] sm:$0xff] %v344_v21 }
 0x2ee PF: > { %s13_s12 = sadd.s32 1, %s454_s12  }
 0x2ef   : > { %p10_p4 = scmp.ge.s32.totalorder %s13_s12, 4  }
 0x2f1   :  { %12 = sbr.rel (!%p10_p4) target bundleno = 1 (0x1), region = 62 }

// kernel: generator_forward.55
= control target key start
LH: loop header
LB: loop body
LE: loop exit
PB: predicated region body
PF: predicated region fallthrough
CT: control target
= control target key end

     0   :  { %s508_s12 = smov 0   ;;  %s510_s13 = smov 0   ;;  %s571_s0 = inlined_call_operand.vmem [shape: f32[4,72], index: 0, kind: input, shape index: {}]   ;;  %s572_s1 = inlined_call_operand.vmem [shape: f32[4,1], index: 1, kind: input, shape index: {}]   ;;  %s573_s2 = inlined_call_operand.vmem [shape: f32[2,72,256], index: 2, kind: input, shape index: {}]   ;;  %s574_s3 = inlined_call_operand.vmem [shape: f32[2,4,256], index: 3, kind: output, shape index: {}]  }
   0x1   :  { %s512_s14 = smov 0  }
   0x2 LB: > { %s25_s15 = sadd.s32 1, %s480_s13  ;;  %p410_p0 = scmp.ge.s32.totalorder %s484_s14, 1  ;;  %s484_s14 = sphi %s512_s14, %s13_s14   ;;  %s480_s13 = sphi %s510_s13, %s576_s13   ;;  %s476_s12 = sphi %s508_s12, %s575_s12  }
   0x3   : > { %p27_p1 = scmp.ge.s32.totalorder %s25_s15, 2  ;;  %p158_p2 = scmp.lt.s32.totalorder %s484_s14, 3 }
   0x5   : > { %s578_s15 = smov (%p27_p1, %s25_s15), 0  ;;  %p159_p3 = pnand %p410_p0, %p158_p2 }
   0x6   : > { %p191_p4 = scmp.lt.s32.totalorder (!%p159_p3), %s476_s12, 1  ;;  %v486_v0 = vmov (!%p159_p3), 0.0   ;;  %v487_v1 = vmov (!%p159_p3), 0   ;;  %v229_v2 = vld [vmem:[%s572_s1] sm:$0xf] (!%p159_p3)  ;;  %vm235_vm0 = vcmask (!%p159_p3), 588800  }
   0x7   : > { %162 = sbr.rel (%p159_p3) target bundleno = 261 (0x105), region = 32  ;;  %303 = vmatprep.mubr.f32.mxu0 (!%p159_p3), %v486_v0  ;;  %461 = vset.pattern.permute.xlu0 (!%p159_p3), %v487_v1  ;;  %v210_v29 = vld [vmem:[%s571_s0] sm:$0xf] (!%p159_p3) }
   0x8   : > { %232 = vperm.xlu0 (!%p159_p3), %461, %v229_v2  }
   0xe   : > { %s580_s12 = smov (!%p191_p4, %s476_s12), 1 }
   0xf   : > { %s434_s18 = smul.u32 144, %s580_s12  ;;  %s417_s24 = sshll.u32 %s580_s12, 3 }
  0x10   : > { %s208_s27 = scalar_lea.vmem %s574_s3, %s417_s24 }
  0x11   : > { %s535_s21 = scalar_lea.vmem %s573_s2, %s434_s18 }
  0x12   : > { %v212_v3 = vld [vmem:[%s535_s21 + $0x8] sm:$0xff]  ;;  %v214_v4 = vld [vmem:[%s535_s21 + $0x18] sm:$0xff]  ;;  %v211_v5 = vld [vmem:[%s535_s21] sm:$0xff] }
  0x13   : > { %v418_v6 = vpack.c.bf16 %v214_v4, %v212_v3  ;;  %v213_v7 = vld [vmem:[%s535_s21 + $0x10] sm:$0xff]  ;;  %v216_v8 = vld [vmem:[%s535_s21 + $0x28] sm:$0xff]  ;;  %v218_v9 = vld [vmem:[%s535_s21 + $0x38] sm:$0xff] }
  0x14   : > { %v420_v10 = vpack.c.bf16 %v213_v7, %v211_v5  ;;  %v422_v11 = vpack.c.bf16 %v218_v9, %v216_v8  ;;  %v215_v12 = vld [vmem:[%s535_s21 + $0x20] sm:$0xff]  ;;  %v217_v13 = vld [vmem:[%s535_s21 + $0x30] sm:$0xff]  ;;  %v220_v14 = vld [vmem:[%s535_s21 + $0x48] sm:$0xff] }
  0x15   : > { %419 = vmatprep.subr.bf16.mxu0 %v418_v6  ;;  %v222_v15 = vld [vmem:[%s535_s21 + $0x58] sm:$0xff]  ;;  %v424_v16 = vpack.c.bf16 %v217_v13, %v215_v12  ;;  %v219_v18 = vld [vmem:[%s535_s21 + $0x40] sm:$0xff]  ;;  %v221_v19 = vld [vmem:[%s535_s21 + $0x50] sm:$0xff] }
  0x16   : > { %421 = vmatpush1.bf16.msra.mxu0 %v420_v10  ;;  %v426_v17 = vpack.c.bf16 %v222_v15, %v220_v14  ;;  %v224_v20 = vld [vmem:[%s535_s21 + $0x68] sm:$0xff]  ;;  %v226_v21 = vld [vmem:[%s535_s21 + $0x78] sm:$0xff]  ;;  %v428_v22 = vpack.c.bf16 %v221_v19, %v219_v18  ;;  %v223_v24 = vld [vmem:[%s535_s21 + $0x60] sm:$0xff] }
  0x17   : > { %423 = vmatprep.subr.bf16.mxu0 %v422_v11  ;;  %v430_v23 = vpack.c.bf16 %v226_v21, %v224_v20  ;;  %v225_v25 = vld [vmem:[%s535_s21 + $0x70] sm:$0xff]  ;;  %v228_v27 = vld [vmem:[%s535_s21 + $0x88] sm:$0xff]  ;;  %v227_v28 = vld [vmem:[%s535_s21 + $0x80] sm:$0xff] }
  0x18   : > { %v432_v26 = vpack.c.bf16 %v225_v25, %v223_v24 }
  0x1a   : > { %425 = vmatpush1.bf16.msra.mxu0 %v424_v16 }
  0x1b   : > { %427 = vmatprep.subr.bf16.mxu0 %v426_v17 }
  0x1e   : > { %429 = vmatpush1.bf16.msra.mxu0 %v428_v22 }
  0x1f   : > { %431 = vmatprep.subr.bf16.mxu0 %v430_v23 }
  0x22   : > { %433 = vmatpush1.bf16.msra.mxu0 %v432_v26 }
  0x23   : > { %255 = vmatprep.subr.mxu0 %v228_v27 }
  0x26   : > { %256 = vmatpush1.msra.mxu0 %v227_v28 }
  0x27   : > { %414 = vmatmul.mubr.msk.f32.vlgmr.msra.gmra.mrb[0].mxu0 %vm235_vm0, %v210_v29 }
  0x87   : > { %v233_v30 = vpop.permute.xlu0 %232 }
  0xfa   : > { %v305_v31 = vpop.f32.mrb[0].mxu0 }
  0xfb   : > { %v306_v32 = vadd.f32 %v305_v31, %v233_v30  ;;  %v307_v33 = vpop.f32.mrb[1].mxu0 }
  0xfc   : > { %v308_v34 = vadd.f32 %v307_v33, %v233_v30 }
  0xfd   : > { %v310_v35 = vmul.f32 0.2, %v306_v32 }
  0xfe   : > { %v311_v36 = vmul.f32 0.2, %v308_v34 }
  0xff   : > { %v312_v37 = vmax.f32 %v306_v32, %v310_v35 }
 0x100   : > { %v313_v38 = vmax.f32 %v308_v34, %v311_v36 }
 0x102   : > { %v316_v39 = vcombine.low %v312_v37, %v313_v38 }
 0x104   : > { %318 = vst [vmem:[%s208_s27] sm:$0xff] %v316_v39 }
 0x105 PF: > { %s13_s14 = sadd.s32 1, %s484_s14   ;;  %s575_s12 = smov %s480_s13 }
 0x106   : > { %p10_p5 = scmp.ge.s32.totalorder %s13_s14, 4   ;;  %s576_s13 = smov %s578_s15 }
 0x108   :  { %12 = sbr.rel (!%p10_p5) target bundleno = 2 (0x2), region = 62 }

// kernel: generator_forward.56
= control target key start
LH: loop header
LB: loop body
LE: loop exit
PB: predicated region body
PF: predicated region fallthrough
CT: control target
= control target key end

     0   :  { %s543_s12 = smov 0   ;;  %s545_s13 = smov 0   ;;  %s616_s0 = inlined_call_operand.vmem [shape: f32[4,108], index: 0, kind: input, shape index: {}]   ;;  %s617_s1 = inlined_call_operand.vmem [shape: f32[4,1], index: 1, kind: input, shape index: {}]   ;;  %s618_s2 = inlined_call_operand.vmem [shape: f32[2,108,256], index: 2, kind: input, shape index: {}]   ;;  %s619_s3 = inlined_call_operand.vmem [shape: f32[2,4,256], index: 3, kind: output, shape index: {}]  }
   0x1   :  { %s547_s14 = smov 0  }
   0x2 LB: > { %s25_s15 = sadd.s32 1, %s514_s13  ;;  %p427_p0 = scmp.ge.s32.totalorder %s518_s14, 1  ;;  %s518_s14 = sphi %s547_s14, %s13_s14   ;;  %s514_s13 = sphi %s545_s13, %s621_s13   ;;  %s510_s12 = sphi %s543_s12, %s620_s12  }
   0x3   : > { %p27_p1 = scmp.ge.s32.totalorder %s25_s15, 2  ;;  %p158_p2 = scmp.lt.s32.totalorder %s518_s14, 3 }
   0x5   : > { %s623_s15 = smov (%p27_p1, %s25_s15), 0  ;;  %p159_p3 = pnand %p427_p0, %p158_p2 }
   0x6   : > { %p191_p4 = scmp.lt.s32.totalorder (!%p159_p3), %s510_s12, 1  ;;  %v520_v0 = vmov (!%p159_p3), 0.0   ;;  %v239_v1 = vld [vmem:[%s617_s1] sm:$0xf] (!%p159_p3)  ;;  %v521_v2 = vmov (!%p159_p3), 0   ;;  %vm249_vm0 = vcmask (!%p159_p3), 1043456  }
   0x7   : > { %162 = sbr.rel (%p159_p3) target bundleno = 271 (0x10f), region = 32  ;;  %320 = vmatprep.mubr.f32.mxu0 (!%p159_p3), %v520_v0  ;;  %495 = vset.pattern.permute.xlu0 (!%p159_p3), %v521_v2  ;;  %vm522_vm1 = vmmov (!%p159_p3), 1   ;;  %v210_v45 = vld [vmem:[%s616_s0] sm:$0xf] (!%p159_p3)  ;;  %vm245_vm3 = vcmask (!%p159_p3), 883712  }
   0x8   : > { %242 = vperm.xlu0 (!%p159_p3), %495, %v239_v1   ;;  %vm462_vm2 = vmpackc.low (!%p159_p3), %vm249_vm0, %vm522_vm1 }
   0xe   : > { %s625_s12 = smov (!%p191_p4, %s510_s12), 1 }
   0xf   : > { %s467_s18 = smul.u32 224, %s625_s12  ;;  %s436_s24 = sshll.u32 %s625_s12, 3 }
  0x10   : > { %s208_s27 = scalar_lea.vmem %s619_s3, %s436_s24 }
  0x11   : > { %s570_s21 = scalar_lea.vmem %s618_s2, %s467_s18 }
  0x12   : > { %v212_v3 = vld [vmem:[%s570_s21 + $0x8] sm:$0xff]  ;;  %v214_v4 = vld [vmem:[%s570_s21 + $0x18] sm:$0xff]  ;;  %v211_v5 = vld [vmem:[%s570_s21] sm:$0xff] }
  0x13   : > { %v437_v6 = vpack.c.bf16 %v214_v4, %v212_v3  ;;  %v213_v7 = vld [vmem:[%s570_s21 + $0x10] sm:$0xff]  ;;  %v216_v8 = vld [vmem:[%s570_s21 + $0x28] sm:$0xff]  ;;  %v218_v9 = vld [vmem:[%s570_s21 + $0x38] sm:$0xff] }
  0x14   : > { %v439_v10 = vpack.c.bf16 %v213_v7, %v211_v5  ;;  %v441_v11 = vpack.c.bf16 %v218_v9, %v216_v8  ;;  %v215_v12 = vld [vmem:[%s570_s21 + $0x20] sm:$0xff]  ;;  %v217_v13 = vld [vmem:[%s570_s21 + $0x30] sm:$0xff]  ;;  %v220_v14 = vld [vmem:[%s570_s21 + $0x48] sm:$0xff] }
  0x15   : > { %438 = vmatprep.subr.bf16.mxu0 %v437_v6  ;;  %v222_v15 = vld [vmem:[%s570_s21 + $0x58] sm:$0xff]  ;;  %v443_v16 = vpack.c.bf16 %v217_v13, %v215_v12  ;;  %v219_v18 = vld [vmem:[%s570_s21 + $0x40] sm:$0xff]  ;;  %v221_v19 = vld [vmem:[%s570_s21 + $0x50] sm:$0xff] }
  0x16   : > { %440 = vmatpush1.bf16.msra.mxu0 %v439_v10  ;;  %v445_v17 = vpack.c.bf16 %v222_v15, %v220_v14  ;;  %v224_v20 = vld [vmem:[%s570_s21 + $0x68] sm:$0xff]  ;;  %v226_v21 = vld [vmem:[%s570_s21 + $0x78] sm:$0xff]  ;;  %v447_v22 = vpack.c.bf16 %v221_v19, %v219_v18  ;;  %v223_v24 = vld [vmem:[%s570_s21 + $0x60] sm:$0xff] }
  0x17   : > { %442 = vmatprep.subr.bf16.mxu0 %v441_v11  ;;  %v449_v23 = vpack.c.bf16 %v226_v21, %v224_v20  ;;  %v225_v25 = vld [vmem:[%s570_s21 + $0x70] sm:$0xff]  ;;  %v228_v26 = vld [vmem:[%s570_s21 + $0x88] sm:$0xff]  ;;  %v230_v27 = vld [vmem:[%s570_s21 + $0x98] sm:$0xff] }
  0x18   : > { %v451_v28 = vpack.c.bf16 %v225_v25, %v223_v24  ;;  %v453_v29 = vpack.c.bf16 %v230_v27, %v228_v26  ;;  %v227_v30 = vld [vmem:[%s570_s21 + $0x80] sm:$0xff]  ;;  %v229_v31 = vld [vmem:[%s570_s21 + $0x90] sm:$0xff]  ;;  %v232_v32 = vld [vmem:[%s570_s21 + $0xa8] sm:$0xff] }
  0x19   : > { %v234_v33 = vld [vmem:[%s570_s21 + $0xb8] sm:$0xff]  ;;  %v455_v34 = vpack.c.bf16 %v229_v31, %v227_v30  ;;  %v231_v36 = vld [vmem:[%s570_s21 + $0xa0] sm:$0xff]  ;;  %v233_v37 = vld [vmem:[%s570_s21 + $0xb0] sm:$0xff] }
  0x1a   : > { %444 = vmatpush1.bf16.msra.mxu0 %v443_v16  ;;  %v457_v35 = vpack.c.bf16 %v234_v33, %v232_v32  ;;  %v236_v38 = vld [vmem:[%s570_s21 + $0xc8] sm:$0xff]  ;;  %v238_v39 = vld [vmem:[%s570_s21 + $0xd8] sm:$0xf]  ;;  %v459_v40 = vpack.c.bf16 %v233_v37, %v231_v36  ;;  %v235_v42 = vld [vmem:[%s570_s21 + $0xc0] sm:$0xff] }
  0x1b   : > { %446 = vmatprep.subr.bf16.mxu0 %v445_v17  ;;  %v461_v41 = vpack.c.bf16 %v238_v39, %v236_v38  ;;  %v237_v43 = vld [vmem:[%s570_s21 + $0xd0] sm:$0xf] }
  0x1c   : > { %v464_v44 = vpack.c.bf16 %v237_v43, %v235_v42 }
  0x1e   : > { %448 = vmatpush1.bf16.msra.mxu0 %v447_v22 }
  0x1f   : > { %450 = vmatprep.subr.bf16.mxu0 %v449_v23 }
  0x22   : > { %452 = vmatpush1.bf16.msra.mxu0 %v451_v28 }
  0x23   : > { %454 = vmatprep.subr.bf16.mxu0 %v453_v29 }
  0x26   : > { %456 = vmatpush1.bf16.msra.mxu0 %v455_v34 }
  0x27   : > { %458 = vmatprep.subr.bf16.mxu0 %v457_v35 }
  0x2a   : > { %460 = vmatpush1.bf16.msra.mxu0 %v459_v40 }
  0x2b   : > { %463 = vmatprep.subr.msk.bf16.mxu0 %vm462_vm2, %v461_v41 }
  0x2e   : > { %466 = vmatpush1.bf16.msk.msra.mxu0 %vm462_vm2, %v464_v44 }
  0x31   : > { %433 = vmatmul.mubr.msk.f32.vlgmr.msra.gmra.mrb[0].mxu0 %vm245_vm3, %v210_v45 }
  0x87   : > { %v243_v46 = vpop.permute.xlu0 %242 }
 0x104   : > { %v322_v47 = vpop.f32.mrb[0].mxu0 }
 0x105   : > { %v323_v48 = vadd.f32 %v322_v47, %v243_v46  ;;  %v324_v49 = vpop.f32.mrb[1].mxu0 }
 0x106   : > { %v325_v50 = vadd.f32 %v324_v49, %v243_v46 }
 0x107   : > { %v327_v51 = vmul.f32 0.2, %v323_v48 }
 0x108   : > { %v328_v52 = vmul.f32 0.2, %v325_v50 }
 0x109   : > { %v329_v53 = vmax.f32 %v323_v48, %v327_v51 }
 0x10a   : > { %v330_v54 = vmax.f32 %v325_v50, %v328_v52 }
 0x10c   : > { %v333_v55 = vcombine.low %v329_v53, %v330_v54 }
 0x10e   : > { %335 = vst [vmem:[%s208_s27] sm:$0xff] %v333_v55 }
 0x10f PF: > { %s13_s14 = sadd.s32 1, %s518_s14   ;;  %s620_s12 = smov %s514_s13 }
 0x110   : > { %p10_p5 = scmp.ge.s32.totalorder %s13_s14, 4   ;;  %s621_s13 = smov %s623_s15 }
 0x112   :  { %12 = sbr.rel (!%p10_p5) target bundleno = 2 (0x2), region = 62 }

// kernel: generator_forward.57
= control target key start
LH: loop header
LB: loop body
LE: loop exit
PB: predicated region body
PF: predicated region fallthrough
CT: control target
= control target key end

     0   :  { %s546_s12 = smov 0   ;;  %s548_s13 = smov 0   ;;  %s632_s0 = inlined_call_operand.vmem [shape: f32[4,144], index: 0, kind: input, shape index: {}]   ;;  %s633_s1 = inlined_call_operand.vmem [shape: f32[4,1], index: 1, kind: input, shape index: {}]   ;;  %s634_s2 = inlined_call_operand.vmem [shape: f32[2,144,256], index: 2, kind: input, shape index: {}]   ;;  %s635_s3 = inlined_call_operand.vmem [shape: f32[2,4,256], index: 3, kind: output, shape index: {}]  }
   0x1   :  { %s550_s14 = smov 0  }
   0x2 LB: > { %s25_s15 = sadd.s32 1, %s519_s13  ;;  %p429_p0 = scmp.ge.s32.totalorder %s523_s14, 1  ;;  %s523_s14 = sphi %s550_s14, %s13_s14   ;;  %s519_s13 = sphi %s548_s13, %s637_s13   ;;  %s515_s12 = sphi %s546_s12, %s636_s12  }
   0x3   : > { %p27_p1 = scmp.ge.s32.totalorder %s25_s15, 2  ;;  %p158_p2 = scmp.lt.s32.totalorder %s523_s14, 3 }
   0x5   : > { %s639_s15 = smov (%p27_p1, %s25_s15), 0  ;;  %p159_p3 = pnand %p429_p0, %p158_p2 }
   0x6   : > { %p191_p4 = scmp.lt.s32.totalorder (!%p159_p3), %s515_s12, 1  ;;  %v567_v0 = vld [vmem:[%s632_s0] sm:$0xff] (!%p159_p3)  ;;  %vm255_vm0 = vcmask (!%p159_p3), 130048   ;;  %v525_v3 = vmov (!%p159_p3), 0  }
   0x7   : > { %162 = sbr.rel (%p159_p3) target bundleno = 279 (0x117), region = 32  ;;  %v247_v1 = vld [vmem:[%s633_s1] sm:$0xf] (!%p159_p3)  ;;  %v254_v2 = vcombine.high (!%p159_p3), %v567_v0, %v567_v0  ;;  %499 = vset.pattern.permute.xlu0 (!%p159_p3), %v525_v3 }
   0x8   : > { %250 = vperm.xlu0 (!%p159_p3), %499, %v247_v1  }
   0x9   : > { %433 = vmatprep.mubr.msk.f32.mxu0 (!%p159_p3), %vm255_vm0, %v254_v2 }
   0xe   : > { %s641_s12 = smov (!%p191_p4, %s515_s12), 1 }
   0xf   : > { %s473_s20 = smul.u32 288, %s641_s12  ;;  %s436_s24 = sshll.u32 %s641_s12, 3 }
  0x10   : > { %s208_s27 = scalar_lea.vmem %s635_s3, %s436_s24 }
  0x11   : > { %s580_s23 = scalar_lea.vmem %s634_s2, %s473_s20 }
  0x12   : > { %v212_v4 = vld [vmem:[%s580_s23 + $0x8] sm:$0xff]  ;;  %v214_v5 = vld [vmem:[%s580_s23 + $0x18] sm:$0xff]  ;;  %v211_v6 = vld [vmem:[%s580_s23] sm:$0xff] }
  0x13   : > { %v437_v7 = vpack.c.bf16 %v214_v5, %v212_v4  ;;  %v213_v8 = vld [vmem:[%s580_s23 + $0x10] sm:$0xff]  ;;  %v216_v9 = vld [vmem:[%s580_s23 + $0x28] sm:$0xff]  ;;  %v218_v10 = vld [vmem:[%s580_s23 + $0x38] sm:$0xff] }
  0x14   : > { %v439_v11 = vpack.c.bf16 %v213_v8, %v211_v6  ;;  %v441_v12 = vpack.c.bf16 %v218_v10, %v216_v9  ;;  %v215_v13 = vld [vmem:[%s580_s23 + $0x20] sm:$0xff]  ;;  %v217_v14 = vld [vmem:[%s580_s23 + $0x30] sm:$0xff]  ;;  %v220_v15 = vld [vmem:[%s580_s23 + $0x48] sm:$0xff] }
  0x15   : > { %438 = vmatprep.subr.bf16.mxu0 %v437_v7  ;;  %v222_v16 = vld [vmem:[%s580_s23 + $0x58] sm:$0xff]  ;;  %v443_v17 = vpack.c.bf16 %v217_v14, %v215_v13  ;;  %v219_v19 = vld [vmem:[%s580_s23 + $0x40] sm:$0xff]  ;;  %v221_v20 = vld [vmem:[%s580_s23 + $0x50] sm:$0xff] }
  0x16   : > { %440 = vmatpush1.bf16.msra.mxu0 %v439_v11  ;;  %v445_v18 = vpack.c.bf16 %v222_v16, %v220_v15  ;;  %v224_v21 = vld [vmem:[%s580_s23 + $0x68] sm:$0xff]  ;;  %v226_v22 = vld [vmem:[%s580_s23 + $0x78] sm:$0xff]  ;;  %v447_v23 = vpack.c.bf16 %v221_v20, %v219_v19  ;;  %v223_v25 = vld [vmem:[%s580_s23 + $0x60] sm:$0xff] }
  0x17   : > { %442 = vmatprep.subr.bf16.mxu0 %v441_v12  ;;  %v449_v24 = vpack.c.bf16 %v226_v22, %v224_v21  ;;  %v225_v26 = vld [vmem:[%s580_s23 + $0x70] sm:$0xff]  ;;  %v228_v27 = vld [vmem:[%s580_s23 + $0x88] sm:$0xff]  ;;  %v230_v28 = vld [vmem:[%s580_s23 + $0x98] sm:$0xff] }
  0x18   : > { %v451_v29 = vpack.c.bf16 %v225_v26, %v223_v25  ;;  %v453_v30 = vpack.c.bf16 %v230_v28, %v228_v27  ;;  %v227_v31 = vld [vmem:[%s580_s23 + $0x80] sm:$0xff]  ;;  %v229_v32 = vld [vmem:[%s580_s23 + $0x90] sm:$0xff]  ;;  %v232_v33 = vld [vmem:[%s580_s23 + $0xa8] sm:$0xff] }
  0x19   : > { %v234_v34 = vld [vmem:[%s580_s23 + $0xb8] sm:$0xff]  ;;  %v455_v35 = vpack.c.bf16 %v229_v32, %v227_v31  ;;  %v231_v37 = vld [vmem:[%s580_s23 + $0xa0] sm:$0xff]  ;;  %v233_v38 = vld [vmem:[%s580_s23 + $0xb0] sm:$0xff] }
  0x1a   : > { %444 = vmatpush1.bf16.msra.mxu0 %v443_v17  ;;  %v457_v36 = vpack.c.bf16 %v234_v34, %v232_v33  ;;  %v236_v39 = vld [vmem:[%s580_s23 + $0xc8] sm:$0xff]  ;;  %v238_v40 = vld [vmem:[%s580_s23 + $0xd8] sm:$0xff]  ;;  %v459_v41 = vpack.c.bf16 %v233_v38, %v231_v37  ;;  %v235_v43 = vld [vmem:[%s580_s23 + $0xc0] sm:$0xff] }
  0x1b   : > { %446 = vmatprep.subr.bf16.mxu0 %v445_v18  ;;  %v461_v42 = vpack.c.bf16 %v238_v40, %v236_v39  ;;  %v237_v44 = vld [vmem:[%s580_s23 + $0xd0] sm:$0xff]  ;;  %v240_v45 = vld [vmem:[%s580_s23 + $0xe8] sm:$0xff]  ;;  %v242_v46 = vld [vmem:[%s580_s23 + $0xf8] sm:$0xff] }
  0x1c   : > { %v463_v47 = vpack.c.bf16 %v237_v44, %v235_v43  ;;  %v465_v48 = vpack.c.bf16 %v242_v46, %v240_v45  ;;  %v239_v49 = vld [vmem:[%s580_s23 + $0xe0] sm:$0xff]  ;;  %v241_v50 = vld [vmem:[%s580_s23 + $0xf0] sm:$0xff]  ;;  %v244_v51 = vld [vmem:[%s580_s23 + $0x108] sm:$0xff] }
  0x1d   : > { %v246_v52 = vld [vmem:[%s580_s23 + $0x118] sm:$0xff]  ;;  %v467_v53 = vpack.c.bf16 %v241_v50, %v239_v49  ;;  %v243_v55 = vld [vmem:[%s580_s23 + $0x100] sm:$0xff]  ;;  %v245_v56 = vld [vmem:[%s580_s23 + $0x110] sm:$0xff] }
  0x1e   : > { %448 = vmatpush1.bf16.msra.mxu0 %v447_v23  ;;  %v469_v54 = vpack.c.bf16 %v246_v52, %v244_v51  ;;  %v471_v57 = vpack.c.bf16 %v245_v56, %v243_v55 }
  0x1f   : > { %450 = vmatprep.subr.bf16.mxu0 %v449_v24 }
  0x22   : > { %452 = vmatpush1.bf16.msra.mxu0 %v451_v29 }
  0x23   : > { %454 = vmatprep.subr.bf16.mxu0 %v453_v30 }
  0x26   : > { %456 = vmatpush1.bf16.msra.mxu0 %v455_v35 }
  0x27   : > { %458 = vmatprep.subr.bf16.mxu0 %v457_v36 }
  0x2a   : > { %460 = vmatpush1.bf16.msra.mxu0 %v459_v41 }
  0x2b   : > { %462 = vmatprep.subr.bf16.mxu0 %v461_v42 }
  0x2e   : > { %464 = vmatpush1.bf16.msra.mxu0 %v463_v47 }
  0x2f   : > { %466 = vmatprep.subr.bf16.mxu0 %v465_v48 }
  0x32   : > { %468 = vmatpush1.bf16.msra.mxu0 %v467_v53 }
  0x33   : > { %470 = vmatprep.subr.bf16.mxu0 %v469_v54 }
  0x36   : > { %472 = vmatpush1.bf16.msra.mxu0 %v471_v57 }
  0x39   : > { %323 = vmatmul.mubr.f32.vlgmr.msra.gmra.mrb[0].mxu0 %v567_v0 }
  0x87   : > { %v251_v58 = vpop.permute.xlu0 %250 }
 0x10c   : > { %v324_v59 = vpop.f32.mrb[0].mxu0 }
 0x10d   : > { %v325_v60 = vadd.f32 %v324_v59, %v251_v58  ;;  %v326_v61 = vpop.f32.mrb[1].mxu0 }
 0x10e   : > { %v327_v62 = vadd.f32 %v326_v61, %v251_v58 }
 0x10f   : > { %v329_v63 = vmul.f32 0.2, %v325_v60 }
 0x110   : > { %v330_v1 = vmul.f32 0.2, %v327_v62 }
 0x111   : > { %v331_v2 = vmax.f32 %v325_v60, %v329_v63 }
 0x112   : > { %v332_v3 = vmax.f32 %v327_v62, %v330_v1 }
 0x114   : > { %v335_v4 = vcombine.low %v331_v2, %v332_v3 }
 0x116   : > { %337 = vst [vmem:[%s208_s27] sm:$0xff] %v335_v4 }
 0x117 PF: > { %s13_s14 = sadd.s32 1, %s523_s14   ;;  %s636_s12 = smov %s519_s13 }
 0x118   : > { %p10_p5 = scmp.ge.s32.totalorder %s13_s14, 4   ;;  %s637_s13 = smov %s639_s15 }
 0x11a   :  { %12 = sbr.rel (!%p10_p5) target bundleno = 2 (0x2), region = 62 }

// kernel: generator_forward.58
= control target key start
LH: loop header
LB: loop body
LE: loop exit
PB: predicated region body
PF: predicated region fallthrough
CT: control target
= control target key end

     0   :  { %s573_s12 = smov 0   ;;  %s575_s13 = smov 0   ;;  %s669_s0 = inlined_call_operand.vmem [shape: f32[4,180], index: 0, kind: input, shape index: {}]   ;;  %s670_s1 = inlined_call_operand.vmem [shape: f32[4,1], index: 1, kind: input, shape index: {}]   ;;  %s671_s2 = inlined_call_operand.vmem [shape: f32[2,180,256], index: 2, kind: input, shape index: {}]   ;;  %s672_s3 = inlined_call_operand.vmem [shape: f32[2,4,256], index: 3, kind: output, shape index: {}]  }
   0x1   :  { %s577_s14 = smov 0  }
   0x2 LB: > { %s25_s15 = sadd.s32 1, %s546_s13  ;;  %p446_p0 = scmp.ge.s32.totalorder %s550_s14, 1  ;;  %s550_s14 = sphi %s577_s14, %s13_s14   ;;  %s546_s13 = sphi %s575_s13, %s674_s13   ;;  %s542_s12 = sphi %s573_s12, %s673_s12  }
   0x3   : > { %p27_p1 = scmp.ge.s32.totalorder %s25_s15, 2  ;;  %p158_p2 = scmp.lt.s32.totalorder %s550_s14, 3 }
   0x5   : > { %s676_s15 = smov (%p27_p1, %s25_s15), 0  ;;  %p159_p3 = pnand %p446_p0, %p158_p2 }
   0x6   : > { %p191_p4 = scmp.lt.s32.totalorder (!%p159_p3), %s542_s12, 1  ;;  %v594_v0 = vld [vmem:[%s669_s0] sm:$0xff] (!%p159_p3)  ;;  %vm265_vm0 = vcmask (!%p159_p3), 424960   ;;  %v552_v2 = vmov (!%p159_p3), 0   ;;  %vm268_vm1 = vcmask (!%p159_p3), 1043456  }
   0x7   : > { %162 = sbr.rel (%p159_p3) target bundleno = 289 (0x121), region = 32  ;;  %v264_v1 = vcombine.high (!%p159_p3), %v594_v0, %v594_v0  ;;  %526 = vset.pattern.permute.xlu0 (!%p159_p3), %v552_v2  ;;  %v257_v3 = vld [vmem:[%s670_s1] sm:$0xf] (!%p159_p3) }
   0x8   : > { %260 = vperm.xlu0 (!%p159_p3), %526, %v257_v3  }
   0x9   : > { %452 = vmatprep.mubr.msk.f32.mxu0 (!%p159_p3), %vm265_vm0, %v264_v1 }
   0xe   : > { %s678_s12 = smov (!%p191_p4, %s542_s12), 1 }
   0xf   : > { %s500_s20 = smul.u32 368, %s678_s12  ;;  %s455_s24 = sshll.u32 %s678_s12, 3 }
  0x10   : > { %s208_s27 = scalar_lea.vmem %s672_s3, %s455_s24 }
  0x11   : > { %s607_s23 = scalar_lea.vmem %s671_s2, %s500_s20 }
  0x12   : > { %v212_v4 = vld [vmem:[%s607_s23 + $0x8] sm:$0xff]  ;;  %v214_v5 = vld [vmem:[%s607_s23 + $0x18] sm:$0xff]  ;;  %v211_v6 = vld [vmem:[%s607_s23] sm:$0xff] }
  0x13   : > { %v456_v7 = vpack.c.bf16 %v214_v5, %v212_v4  ;;  %v213_v8 = vld [vmem:[%s607_s23 + $0x10] sm:$0xff]  ;;  %v216_v9 = vld [vmem:[%s607_s23 + $0x28] sm:$0xff]  ;;  %v218_v10 = vld [vmem:[%s607_s23 + $0x38] sm:$0xff] }
  0x14   : > { %v458_v11 = vpack.c.bf16 %v213_v8, %v211_v6  ;;  %v460_v12 = vpack.c.bf16 %v218_v10, %v216_v9  ;;  %v215_v13 = vld [vmem:[%s607_s23 + $0x20] sm:$0xff]  ;;  %v217_v14 = vld [vmem:[%s607_s23 + $0x30] sm:$0xff]  ;;  %v220_v15 = vld [vmem:[%s607_s23 + $0x48] sm:$0xff] }
  0x15   : > { %457 = vmatprep.subr.bf16.mxu0 %v456_v7  ;;  %v222_v16 = vld [vmem:[%s607_s23 + $0x58] sm:$0xff]  ;;  %v462_v17 = vpack.c.bf16 %v217_v14, %v215_v13  ;;  %v219_v19 = vld [vmem:[%s607_s23 + $0x40] sm:$0xff]  ;;  %v221_v20 = vld [vmem:[%s607_s23 + $0x50] sm:$0xff] }
  0x16   : > { %459 = vmatpush1.bf16.msra.mxu0 %v458_v11  ;;  %v464_v18 = vpack.c.bf16 %v222_v16, %v220_v15  ;;  %v224_v21 = vld [vmem:[%s607_s23 + $0x68] sm:$0xff]  ;;  %v226_v22 = vld [vmem:[%s607_s23 + $0x78] sm:$0xff]  ;;  %v466_v23 = vpack.c.bf16 %v221_v20, %v219_v19  ;;  %v223_v25 = vld [vmem:[%s607_s23 + $0x60] sm:$0xff] }
  0x17   : > { %461 = vmatprep.subr.bf16.mxu0 %v460_v12  ;;  %v468_v24 = vpack.c.bf16 %v226_v22, %v224_v21  ;;  %v225_v26 = vld [vmem:[%s607_s23 + $0x70] sm:$0xff]  ;;  %v228_v27 = vld [vmem:[%s607_s23 + $0x88] sm:$0xff]  ;;  %v230_v28 = vld [vmem:[%s607_s23 + $0x98] sm:$0xff] }
  0x18   : > { %v470_v29 = vpack.c.bf16 %v225_v26, %v223_v25  ;;  %v472_v30 = vpack.c.bf16 %v230_v28, %v228_v27  ;;  %v227_v31 = vld [vmem:[%s607_s23 + $0x80] sm:$0xff]  ;;  %v229_v32 = vld [vmem:[%s607_s23 + $0x90] sm:$0xff]  ;;  %v232_v33 = vld [vmem:[%s607_s23 + $0xa8] sm:$0xff] }
  0x19   : > { %v234_v34 = vld [vmem:[%s607_s23 + $0xb8] sm:$0xff]  ;;  %v474_v35 = vpack.c.bf16 %v229_v32, %v227_v31  ;;  %v231_v37 = vld [vmem:[%s607_s23 + $0xa0] sm:$0xff]  ;;  %v233_v38 = vld [vmem:[%s607_s23 + $0xb0] sm:$0xff] }
  0x1a   : > { %463 = vmatpush1.bf16.msra.mxu0 %v462_v17  ;;  %v476_v36 = vpack.c.bf16 %v234_v34, %v232_v33  ;;  %v236_v39 = vld [vmem:[%s607_s23 + $0xc8] sm:$0xff]  ;;  %v238_v40 = vld [vmem:[%s607_s23 + $0xd8] sm:$0xff]  ;;  %v478_v41 = vpack.c.bf16 %v233_v38, %v231_v37  ;;  %v235_v43 = vld [vmem:[%s607_s23 + $0xc0] sm:$0xff] }
  0x1b   : > { %465 = vmatprep.subr.bf16.mxu0 %v464_v18  ;;  %v480_v42 = vpack.c.bf16 %v238_v40, %v236_v39  ;;  %v237_v44 = vld [vmem:[%s607_s23 + $0xd0] sm:$0xff]  ;;  %v240_v45 = vld [vmem:[%s607_s23 + $0xe8] sm:$0xff]  ;;  %v242_v46 = vld [vmem:[%s607_s23 + $0xf8] sm:$0xff] }
  0x1c   : > { %v482_v47 = vpack.c.bf16 %v237_v44, %v235_v43  ;;  %v484_v48 = vpack.c.bf16 %v242_v46, %v240_v45  ;;  %v239_v49 = vld [vmem:[%s607_s23 + $0xe0] sm:$0xff]  ;;  %v241_v50 = vld [vmem:[%s607_s23 + $0xf0] sm:$0xff]  ;;  %v244_v51 = vld [vmem:[%s607_s23 + $0x108] sm:$0xff] }
  0x1d   : > { %v246_v52 = vld [vmem:[%s607_s23 + $0x118] sm:$0xff]  ;;  %v486_v53 = vpack.c.bf16 %v241_v50, %v239_v49  ;;  %v243_v55 = vld [vmem:[%s607_s23 + $0x100] sm:$0xff]  ;;  %v245_v56 = vld [vmem:[%s607_s23 + $0x110] sm:$0xff] }
  0x1e   : > { %467 = vmatpush1.bf16.msra.mxu0 %v466_v23  ;;  %v488_v54 = vpack.c.bf16 %v246_v52, %v244_v51  ;;  %v248_v57 = vld [vmem:[%s607_s23 + $0x128] sm:$0xff]  ;;  %v250_v58 = vld [vmem:[%s607_s23 + $0x138] sm:$0xff]  ;;  %v490_v59 = vpack.c.bf16 %v245_v56, %v243_v55  ;;  %v247_v61 = vld [vmem:[%s607_s23 + $0x120] sm:$0xff] }
  0x1f   : > { %469 = vmatprep.subr.bf16.mxu0 %v468_v24  ;;  %v492_v60 = vpack.c.bf16 %v250_v58, %v248_v57  ;;  %v249_v62 = vld [vmem:[%s607_s23 + $0x130] sm:$0xff]  ;;  %v252_v63 = vld [vmem:[%s607_s23 + $0x148] sm:$0xff]  ;;  %v254_v1 = vld [vmem:[%s607_s23 + $0x158] sm:$0xff] }
  0x20   : > { %v494_v2 = vpack.c.bf16 %v249_v62, %v247_v61  ;;  %v496_v3 = vpack.c.bf16 %v254_v1, %v252_v63  ;;  %v251_v4 = vld [vmem:[%s607_s23 + $0x140] sm:$0xff]  ;;  %v253_v5 = vld [vmem:[%s607_s23 + $0x150] sm:$0xff]  ;;  %v256_v7 = vld [vmem:[%s607_s23 + $0x168] sm:$0xf] }
  0x21   : > { %v498_v6 = vpack.c.bf16 %v253_v5, %v251_v4  ;;  %v255_v8 = vld [vmem:[%s607_s23 + $0x160] sm:$0xf] }
  0x22   : > { %471 = vmatpush1.bf16.msra.mxu0 %v470_v29 }
  0x23   : > { %473 = vmatprep.subr.bf16.mxu0 %v472_v30 }
  0x26   : > { %475 = vmatpush1.bf16.msra.mxu0 %v474_v35 }
  0x27   : > { %477 = vmatprep.subr.bf16.mxu0 %v476_v36 }
  0x2a   : > { %479 = vmatpush1.bf16.msra.mxu0 %v478_v41 }
  0x2b   : > { %481 = vmatprep.subr.bf16.mxu0 %v480_v42 }
  0x2e   : > { %483 = vmatpush1.bf16.msra.mxu0 %v482_v47 }
  0x2f   : > { %485 = vmatprep.subr.bf16.mxu0 %v484_v48 }
  0x32   : > { %487 = vmatpush1.bf16.msra.mxu0 %v486_v53 }
  0x33   : > { %489 = vmatprep.subr.bf16.mxu0 %v488_v54 }
  0x36   : > { %491 = vmatpush1.bf16.msra.mxu0 %v490_v59 }
  0x37   : > { %493 = vmatprep.subr.bf16.mxu0 %v492_v60 }
  0x3a   : > { %495 = vmatpush1.bf16.msra.mxu0 %v494_v2 }
  0x3b   : > { %497 = vmatprep.subr.bf16.mxu0 %v496_v3 }
  0x3e   : > { %499 = vmatpush1.bf16.msra.mxu0 %v498_v6 }
  0x3f   : > { %450 = vmatprep.subr.msk.mxu0 %vm268_vm1, %v256_v7 }
  0x42   : > { %451 = vmatpush1.msk.msra.mxu0 %vm268_vm1, %v255_v8 }
  0x43   : > { %340 = vmatmul.mubr.f32.vlgmr.msra.gmra.mrb[0].mxu0 %v594_v0 }
  0x87   : > { %v261_v9 = vpop.permute.xlu0 %260 }
 0x116   : > { %v341_v10 = vpop.f32.mrb[0].mxu0 }
 0x117   : > { %v342_v11 = vadd.f32 %v341_v10, %v261_v9  ;;  %v343_v12 = vpop.f32.mrb[1].mxu0 }
 0x118   : > { %v344_v13 = vadd.f32 %v343_v12, %v261_v9 }
 0x119   : > { %v346_v14 = vmul.f32 0.2, %v342_v11 }
 0x11a   : > { %v347_v15 = vmul.f32 0.2, %v344_v13 }
 0x11b   : > { %v348_v16 = vmax.f32 %v342_v11, %v346_v14 }
 0x11c   : > { %v349_v17 = vmax.f32 %v344_v13, %v347_v15 }
 0x11e   : > { %v352_v18 = vcombine.low %v348_v16, %v349_v17 }
 0x120   : > { %354 = vst [vmem:[%s208_s27] sm:$0xff] %v352_v18 }
 0x121 PF: > { %s13_s14 = sadd.s32 1, %s550_s14   ;;  %s673_s12 = smov %s546_s13 }
 0x122   : > { %p10_p5 = scmp.ge.s32.totalorder %s13_s14, 4   ;;  %s674_s13 = smov %s676_s15 }
 0x124   :  { %12 = sbr.rel (!%p10_p5) target bundleno = 2 (0x2), region = 62 }

// kernel: generator_forward.59
= control target key start
LH: loop header
LB: loop body
LE: loop exit
PB: predicated region body
PF: predicated region fallthrough
CT: control target
= control target key end

     0   :  { %s669_s15 = smov 0   ;;  %s671_s16 = smov 0   ;;  %s774_s0 = inlined_call_operand.vmem [shape: f32[8,216], index: 0, kind: input, shape index: {}]   ;;  %s775_s1 = inlined_call_operand.vmem [shape: f32[8,1], index: 1, kind: input, shape index: {}]   ;;  %s776_s2 = inlined_call_operand.vmem [shape: f32[2,216,256], index: 2, kind: input, shape index: {}]   ;;  %s777_s3 = inlined_call_operand.vmem [shape: f32[2,8,256], index: 3, kind: input, shape index: {}]   ;;  %s778_s4 = inlined_call_operand.vmem [shape: f32[2,8,256], index: 4, kind: output, shape index: {}]  }
   0x1   :  { %s673_s17 = smov 0  }
   0x2 LB: > { %s26_s18 = sadd.s32 1, %s637_s16  ;;  %p529_p0 = scmp.ge.s32.totalorder %s641_s17, 1  ;;  %s641_s17 = sphi %s673_s17, %s14_s17   ;;  %s637_s16 = sphi %s671_s16, %s780_s16   ;;  %s633_s15 = sphi %s669_s15, %s779_s15  }
   0x3   : > { %p28_p1 = scmp.ge.s32.totalorder %s26_s18, 2  ;;  %p200_p2 = scmp.lt.s32.totalorder %s641_s17, 3 }
   0x5   : > { %s782_s18 = smov (%p28_p1, %s26_s18), 0  ;;  %p201_p3 = pnand %p529_p0, %p200_p2 }
   0x6   : > { %p244_p4 = scmp.lt.s32.totalorder (!%p201_p3), %s633_s15, 1  ;;  %v274_v0 = vld [vmem:[%s774_s0 + $0x8] sm:$0xff] (!%p201_p3)  ;;  %vm335_vm0 = vcmask (!%p201_p3), 719872   ;;  %v329_v1 = vld [vmem:[%s775_s1] sm:$0xff] (!%p201_p3)  ;;  %v643_v2 = vmov (!%p201_p3), 0  }
   0x7   : > { %204 = sbr.rel (%p201_p3) target bundleno = 297 (0x129), region = 36  ;;  %535 = vmatprep.mubr.msk.f32.mxu0 (!%p201_p3), %vm335_vm0, %v274_v0  ;;  %618 = vset.pattern.permute.xlu0 (!%p201_p3), %v643_v2 }
   0x8   : > { %332 = vperm.xlu0 (!%p201_p3), %618, %v329_v1  }
   0xe   : > { %s784_s15 = smov (!%p244_p4, %s633_s15), 1 }
   0xf   : > { %s592_s23 = smul.u32 432, %s784_s15  ;;  %s538_s29 = sshll.u32 %s784_s15, 4 }
  0x10   : > { %s261_s6 = scalar_lea.vmem %s777_s3, %s538_s29  ;;  %s271_s9 = scalar_lea.vmem %s778_s4, %s538_s29 }
  0x11   : > { %s699_s26 = scalar_lea.vmem %s776_s2, %s592_s23 }
  0x12   : > { %v276_v3 = vld [vmem:[%s699_s26 + $0x8] sm:$0xff]  ;;  %v278_v4 = vld [vmem:[%s699_s26 + $0x18] sm:$0xff]  ;;  %v275_v5 = vld [vmem:[%s699_s26] sm:$0xff] }
  0x13   : > { %v540_v6 = vpack.c.bf16 %v278_v4, %v276_v3  ;;  %v277_v7 = vld [vmem:[%s699_s26 + $0x10] sm:$0xff]  ;;  %v280_v8 = vld [vmem:[%s699_s26 + $0x28] sm:$0xff]  ;;  %v282_v9 = vld [vmem:[%s699_s26 + $0x38] sm:$0xff] }
  0x14   : > { %v542_v10 = vpack.c.bf16 %v277_v7, %v275_v5  ;;  %v544_v11 = vpack.c.bf16 %v282_v9, %v280_v8  ;;  %v279_v12 = vld [vmem:[%s699_s26 + $0x20] sm:$0xff]  ;;  %v281_v13 = vld [vmem:[%s699_s26 + $0x30] sm:$0xff]  ;;  %v284_v14 = vld [vmem:[%s699_s26 + $0x48] sm:$0xff] }
  0x15   : > { %541 = vmatprep.subr.bf16.mxu0 %v540_v6  ;;  %v286_v15 = vld [vmem:[%s699_s26 + $0x58] sm:$0xff]  ;;  %v546_v16 = vpack.c.bf16 %v281_v13, %v279_v12  ;;  %v283_v18 = vld [vmem:[%s699_s26 + $0x40] sm:$0xff]  ;;  %v285_v19 = vld [vmem:[%s699_s26 + $0x50] sm:$0xff] }
  0x16   : > { %543 = vmatpush1.bf16.msra.mxu0 %v542_v10  ;;  %v548_v17 = vpack.c.bf16 %v286_v15, %v284_v14  ;;  %v288_v20 = vld [vmem:[%s699_s26 + $0x68] sm:$0xff]  ;;  %v290_v21 = vld [vmem:[%s699_s26 + $0x78] sm:$0xff]  ;;  %v550_v22 = vpack.c.bf16 %v285_v19, %v283_v18  ;;  %v287_v24 = vld [vmem:[%s699_s26 + $0x60] sm:$0xff] }
  0x17   : > { %545 = vmatprep.subr.bf16.mxu0 %v544_v11  ;;  %v552_v23 = vpack.c.bf16 %v290_v21, %v288_v20  ;;  %v289_v25 = vld [vmem:[%s699_s26 + $0x70] sm:$0xff]  ;;  %v292_v26 = vld [vmem:[%s699_s26 + $0x88] sm:$0xff]  ;;  %v294_v27 = vld [vmem:[%s699_s26 + $0x98] sm:$0xff] }
  0x18   : > { %v554_v28 = vpack.c.bf16 %v289_v25, %v287_v24  ;;  %v556_v29 = vpack.c.bf16 %v294_v27, %v292_v26  ;;  %v291_v30 = vld [vmem:[%s699_s26 + $0x80] sm:$0xff]  ;;  %v293_v31 = vld [vmem:[%s699_s26 + $0x90] sm:$0xff]  ;;  %v296_v32 = vld [vmem:[%s699_s26 + $0xa8] sm:$0xff] }
  0x19   : > { %v298_v33 = vld [vmem:[%s699_s26 + $0xb8] sm:$0xff]  ;;  %v558_v34 = vpack.c.bf16 %v293_v31, %v291_v30  ;;  %v295_v36 = vld [vmem:[%s699_s26 + $0xa0] sm:$0xff]  ;;  %v297_v37 = vld [vmem:[%s699_s26 + $0xb0] sm:$0xff] }
  0x1a   : > { %547 = vmatpush1.bf16.msra.mxu0 %v546_v16  ;;  %v560_v35 = vpack.c.bf16 %v298_v33, %v296_v32  ;;  %v300_v38 = vld [vmem:[%s699_s26 + $0xc8] sm:$0xff]  ;;  %v302_v39 = vld [vmem:[%s699_s26 + $0xd8] sm:$0xff]  ;;  %v562_v40 = vpack.c.bf16 %v297_v37, %v295_v36  ;;  %v299_v42 = vld [vmem:[%s699_s26 + $0xc0] sm:$0xff] }
  0x1b   : > { %549 = vmatprep.subr.bf16.mxu0 %v548_v17  ;;  %v564_v41 = vpack.c.bf16 %v302_v39, %v300_v38  ;;  %v301_v43 = vld [vmem:[%s699_s26 + $0xd0] sm:$0xff]  ;;  %v304_v44 = vld [vmem:[%s699_s26 + $0xe8] sm:$0xff]  ;;  %v306_v45 = vld [vmem:[%s699_s26 + $0xf8] sm:$0xff] }
  0x1c   : > { %v566_v46 = vpack.c.bf16 %v301_v43, %v299_v42  ;;  %v568_v47 = vpack.c.bf16 %v306_v45, %v304_v44  ;;  %v303_v48 = vld [vmem:[%s699_s26 + $0xe0] sm:$0xff]  ;;  %v305_v49 = vld [vmem:[%s699_s26 + $0xf0] sm:$0xff]  ;;  %v308_v50 = vld [vmem:[%s699_s26 + $0x108] sm:$0xff] }
  0x1d   : > { %v310_v51 = vld [vmem:[%s699_s26 + $0x118] sm:$0xff]  ;;  %v570_v52 = vpack.c.bf16 %v305_v49, %v303_v48  ;;  %v307_v54 = vld [vmem:[%s699_s26 + $0x100] sm:$0xff]  ;;  %v309_v55 = vld [vmem:[%s699_s26 + $0x110] sm:$0xff] }
  0x1e   : > { %551 = vmatpush1.bf16.msra.mxu0 %v550_v22  ;;  %v572_v53 = vpack.c.bf16 %v310_v51, %v308_v50  ;;  %v312_v56 = vld [vmem:[%s699_s26 + $0x128] sm:$0xff]  ;;  %v314_v57 = vld [vmem:[%s699_s26 + $0x138] sm:$0xff]  ;;  %v574_v58 = vpack.c.bf16 %v309_v55, %v307_v54  ;;  %v311_v60 = vld [vmem:[%s699_s26 + $0x120] sm:$0xff] }
  0x1f   : > { %553 = vmatprep.subr.bf16.mxu0 %v552_v23  ;;  %v576_v59 = vpack.c.bf16 %v314_v57, %v312_v56  ;;  %v313_v61 = vld [vmem:[%s699_s26 + $0x130] sm:$0xff]  ;;  %v316_v62 = vld [vmem:[%s699_s26 + $0x148] sm:$0xff]  ;;  %v318_v63 = vld [vmem:[%s699_s26 + $0x158] sm:$0xff] }
  0x20   : > { %v578_v0 = vpack.c.bf16 %v313_v61, %v311_v60  ;;  %v580_v1 = vpack.c.bf16 %v318_v63, %v316_v62  ;;  %v315_v2 = vld [vmem:[%s699_s26 + $0x140] sm:$0xff]  ;;  %v317_v3 = vld [vmem:[%s699_s26 + $0x150] sm:$0xff]  ;;  %v320_v4 = vld [vmem:[%s699_s26 + $0x168] sm:$0xff] }
  0x21   : > { %v322_v5 = vld [vmem:[%s699_s26 + $0x178] sm:$0xff]  ;;  %v582_v6 = vpack.c.bf16 %v317_v3, %v315_v2  ;;  %v319_v8 = vld [vmem:[%s699_s26 + $0x160] sm:$0xff]  ;;  %v321_v9 = vld [vmem:[%s699_s26 + $0x170] sm:$0xff] }
  0x22   : > { %555 = vmatpush1.bf16.msra.mxu0 %v554_v28  ;;  %v584_v7 = vpack.c.bf16 %v322_v5, %v320_v4  ;;  %v324_v10 = vld [vmem:[%s699_s26 + $0x188] sm:$0xff]  ;;  %v326_v11 = vld [vmem:[%s699_s26 + $0x198] sm:$0xff]  ;;  %v586_v12 = vpack.c.bf16 %v321_v9, %v319_v8  ;;  %v323_v14 = vld [vmem:[%s699_s26 + $0x180] sm:$0xff] }
  0x23   : > { %557 = vmatprep.subr.bf16.mxu0 %v556_v29  ;;  %v588_v13 = vpack.c.bf16 %v326_v11, %v324_v10  ;;  %v325_v15 = vld [vmem:[%s699_s26 + $0x190] sm:$0xff]  ;;  %v328_v17 = vld [vmem:[%s699_s26 + $0x1a8] sm:$0xff]  ;;  %v327_v18 = vld [vmem:[%s699_s26 + $0x1a0] sm:$0xff] }
  0x24   : > { %v590_v16 = vpack.c.bf16 %v325_v15, %v323_v14  ;;  %v273_v19 = vld [vmem:[%s774_s0] sm:$0xff]  ;;  %v413_v27 = vld [vmem:[%s261_s6 + $0x8] sm:$0xff] }
  0x25   : > { %v412_v24 = vld [vmem:[%s261_s6] sm:$0xff] }
  0x26   : > { %559 = vmatpush1.bf16.msra.mxu0 %v558_v34 }
  0x27   : > { %561 = vmatprep.subr.bf16.mxu0 %v560_v35 }
  0x2a   : > { %563 = vmatpush1.bf16.msra.mxu0 %v562_v40 }
  0x2b   : > { %565 = vmatprep.subr.bf16.mxu0 %v564_v41 }
  0x2e   : > { %567 = vmatpush1.bf16.msra.mxu0 %v566_v46 }
  0x2f   : > { %569 = vmatprep.subr.bf16.mxu0 %v568_v47 }
  0x32   : > { %571 = vmatpush1.bf16.msra.mxu0 %v570_v52 }
  0x33   : > { %573 = vmatprep.subr.bf16.mxu0 %v572_v53 }
  0x36   : > { %575 = vmatpush1.bf16.msra.mxu0 %v574_v58 }
  0x37   : > { %577 = vmatprep.subr.bf16.mxu0 %v576_v59 }
  0x3a   : > { %579 = vmatpush1.bf16.msra.mxu0 %v578_v0 }
  0x3b   : > { %581 = vmatprep.subr.bf16.mxu0 %v580_v1 }
  0x3e   : > { %583 = vmatpush1.bf16.msra.mxu0 %v582_v6 }
  0x3f   : > { %585 = vmatprep.subr.bf16.mxu0 %v584_v7 }
  0x42   : > { %587 = vmatpush1.bf16.msra.mxu0 %v586_v12 }
  0x43   : > { %589 = vmatprep.subr.bf16.mxu0 %v588_v13 }
  0x46   : > { %591 = vmatpush1.bf16.msra.mxu0 %v590_v16 }
  0x47   : > { %391 = vmatprep.subr.mxu0 %v328_v17 }
  0x4a   : > { %392 = vmatpush1.msra.mxu0 %v327_v18 }
  0x4b   : > { %404 = vmatmul.mubr.f32.vlgmr.msra.gmra.mrb[0].mxu0 %v273_v19 }
  0x87   : > { %v333_v20 = vpop.permute.xlu0 %332 }
 0x11e   : > { %v405_v21 = vpop.f32.mrb[0].mxu0 }
 0x11f   : > { %v406_v22 = vadd.f32 %v405_v21, %v333_v20  ;;  %v407_v23 = vpop.f32.mrb[1].mxu0 }
 0x120   : > { %v408_v25 = vadd.f32 %v407_v23, %v333_v20 }
 0x121   : > { %v410_v26 = vmul.f32 0.2, %v406_v22 }
 0x122   : > { %v411_v28 = vmul.f32 0.2, %v408_v25 }
 0x123   : > { %v414_v29 = vadd.f32 %v412_v24, %v410_v26 }
 0x124   : > { %v415_v30 = vadd.f32 %v413_v27, %v411_v28 }
 0x125   : > { %v416_v31 = vmax.f32 %v414_v29, 0.0 }
 0x126   : > { %v417_v32 = vmax.f32 %v415_v30, 0.0 }
 0x127   : > { %418 = vst [vmem:[%s271_s9] sm:$0xff] %v416_v31 }
 0x128   : > { %419 = vst [vmem:[%s271_s9 + $0x8] sm:$0xff] %v417_v32 }
 0x129 PF: > { %s14_s17 = sadd.s32 1, %s641_s17   ;;  %s779_s15 = smov %s637_s16 }
 0x12a   : > { %p11_p5 = scmp.ge.s32.totalorder %s14_s17, 4   ;;  %s780_s16 = smov %s782_s18 }
 0x12c   :  { %13 = sbr.rel (!%p11_p5) target bundleno = 2 (0x2), region = 69 }

// kernel: generator_forward.70
= control target key start
LH: loop header
LB: loop body
LE: loop exit
PB: predicated region body
PF: predicated region fallthrough
CT: control target
= control target key end

     0   :  { %s572_s15 = smov 0   ;;  %s574_s16 = smov 0   ;;  %s618_s0 = inlined_call_operand.vmem [shape: f32[8,24], index: 0, kind: input, shape index: {}]   ;;  %s619_s1 = inlined_call_operand.vmem [shape: f32[8,1], index: 1, kind: input, shape index: {}]   ;;  %s620_s2 = inlined_call_operand.vmem [shape: f32[2,24,256], index: 2, kind: input, shape index: {}]   ;;  %s621_s3 = inlined_call_operand.vmem [shape: f32[2,8,256], index: 3, kind: input, shape index: {}]   ;;  %s622_s4 = inlined_call_operand.vmem [shape: f32[2,8,256], index: 4, kind: output, shape index: {}]  }
   0x1   :  { %s576_s17 = smov 0  }
   0x2 LB: > { %s26_s18 = sadd.s32 1, %s539_s16  ;;  %p478_p0 = scmp.ge.s32.totalorder %s543_s17, 1  ;;  %s543_s17 = sphi %s576_s17, %s14_s17   ;;  %s539_s16 = sphi %s574_s16, %s624_s16   ;;  %s535_s15 = sphi %s572_s15, %s623_s15  }
   0x3   : > { %p28_p1 = scmp.ge.s32.totalorder %s26_s18, 2  ;;  %p200_p2 = scmp.lt.s32.totalorder %s543_s17, 3 }
   0x5   : > { %s626_s18 = smov (%p28_p1, %s26_s18), 0  ;;  %p201_p3 = pnand %p478_p0, %p200_p2 }
   0x6   : > { %p244_p4 = scmp.lt.s32.totalorder (!%p201_p3), %s535_s15, 1  ;;  %v280_v0 = vld [vmem:[%s619_s1] sm:$0xff] (!%p201_p3)  ;;  %v545_v1 = vmov (!%p201_p3), 0.0   ;;  %v546_v2 = vmov (!%p201_p3), 0   ;;  %vm286_vm0 = vcmask (!%p201_p3), 195584  }
   0x7   : > { %204 = sbr.rel (%p201_p3) target bundleno = 247 (0xf7), region = 36  ;;  %354 = vmatprep.mubr.f32.mxu0 (!%p201_p3), %v545_v1  ;;  %520 = vset.pattern.permute.xlu0 (!%p201_p3), %v546_v2  ;;  %v273_v11 = vld [vmem:[%s618_s0] sm:$0xff] (!%p201_p3) }
   0x8   : > { %283 = vperm.xlu0 (!%p201_p3), %520, %v280_v0  }
   0xe   : > { %s628_s15 = smov (!%p244_p4, %s535_s15), 1 }
   0xf   : > { %s493_s21 = smul.u32 48, %s628_s15  ;;  %s487_s27 = sshll.u32 %s628_s15, 4 }
  0x10   : > { %s261_s30 = scalar_lea.vmem %s621_s3, %s487_s27  ;;  %s271_s7 = scalar_lea.vmem %s622_s4, %s487_s27 }
  0x11   : > { %s251_s24 = scalar_lea.vmem %s620_s2, %s493_s21  ;;  %v363_v16 = vld [vmem:[%s261_s30] sm:$0xff]  ;;  %v364_v19 = vld [vmem:[%s261_s30 + $0x8] sm:$0xff] }
  0x12   : > { %v275_v3 = vld [vmem:[%s251_s24 + $0x8] sm:$0xff]  ;;  %v277_v4 = vld [vmem:[%s251_s24 + $0x18] sm:$0xff]  ;;  %v274_v5 = vld [vmem:[%s251_s24] sm:$0xff] }
  0x13   : > { %v489_v6 = vpack.c.bf16 %v277_v4, %v275_v3  ;;  %v276_v7 = vld [vmem:[%s251_s24 + $0x10] sm:$0xff]  ;;  %v279_v9 = vld [vmem:[%s251_s24 + $0x28] sm:$0xff]  ;;  %v278_v10 = vld [vmem:[%s251_s24 + $0x20] sm:$0xff] }
  0x14   : > { %v491_v8 = vpack.c.bf16 %v276_v7, %v274_v5 }
  0x15   : > { %490 = vmatprep.subr.bf16.mxu0 %v489_v6 }
  0x16   : > { %492 = vmatpush1.bf16.msra.mxu0 %v491_v8 }
  0x17   : > { %294 = vmatprep.subr.mxu0 %v279_v9 }
  0x1a   : > { %295 = vmatpush1.msra.mxu0 %v278_v10 }
  0x1b   : > { %484 = vmatmul.mubr.msk.f32.vlgmr.msra.gmra.mrb[0].mxu0 %vm286_vm0, %v273_v11 }
  0x87   : > { %v284_v12 = vpop.permute.xlu0 %283 }
  0xee   : > { %v356_v13 = vpop.f32.mrb[0].mxu0 }
  0xef   : > { %v357_v14 = vadd.f32 %v356_v13, %v284_v12  ;;  %v358_v15 = vpop.f32.mrb[1].mxu0 }
  0xf0   : > { %v359_v17 = vadd.f32 %v358_v15, %v284_v12 }
  0xf1   : > { %v361_v18 = vmul.f32 0.2, %v357_v14 }
  0xf2   : > { %v362_v20 = vmul.f32 0.2, %v359_v17 }
  0xf3   : > { %v365_v21 = vadd.f32 %v363_v16, %v361_v18 }
  0xf4   : > { %v366_v22 = vadd.f32 %v364_v19, %v362_v20 }
  0xf5   : > { %367 = vst [vmem:[%s271_s7] sm:$0xff] %v365_v21 }
  0xf6   : > { %368 = vst [vmem:[%s271_s7 + $0x8] sm:$0xff] %v366_v22 }
  0xf7 PF: > { %s14_s17 = sadd.s32 1, %s543_s17   ;;  %s623_s15 = smov %s539_s16 }
  0xf8   : > { %p11_p5 = scmp.ge.s32.totalorder %s14_s17, 4   ;;  %s624_s16 = smov %s626_s18 }
  0xfa   :  { %13 = sbr.rel (!%p11_p5) target bundleno = 2 (0x2), region = 69 }

// kernel: generator_forward.102
= control target key start
LH: loop header
LB: loop body
LE: loop exit
PB: predicated region body
PF: predicated region fallthrough
CT: control target
= control target key end

     0   :  { %s574_s15 = smov 0   ;;  %s576_s16 = smov 0   ;;  %s620_s0 = inlined_call_operand.vmem [shape: f32[8,24], index: 0, kind: input, shape index: {}]   ;;  %s621_s1 = inlined_call_operand.vmem [shape: f32[8,1], index: 1, kind: input, shape index: {}]   ;;  %s622_s2 = inlined_call_operand.vmem [shape: f32[2,24,256], index: 2, kind: input, shape index: {}]   ;;  %s623_s3 = inlined_call_operand.vmem [shape: f32[2,8,256], index: 3, kind: input, shape index: {}]   ;;  %s624_s4 = inlined_call_operand.vmem [shape: f32[2,8,256], index: 4, kind: output, shape index: {}]  }
   0x1   :  { %s578_s17 = smov 0  }
   0x2 LB: > { %s26_s18 = sadd.s32 1, %s541_s16  ;;  %p480_p0 = scmp.ge.s32.totalorder %s545_s17, 1  ;;  %s545_s17 = sphi %s578_s17, %s14_s17   ;;  %s541_s16 = sphi %s576_s16, %s626_s16   ;;  %s537_s15 = sphi %s574_s15, %s625_s15  }
   0x3   : > { %p28_p1 = scmp.ge.s32.totalorder %s26_s18, 2  ;;  %p200_p2 = scmp.lt.s32.totalorder %s545_s17, 3 }
   0x5   : > { %s628_s18 = smov (%p28_p1, %s26_s18), 0  ;;  %p201_p3 = pnand %p480_p0, %p200_p2 }
   0x6   : > { %p244_p4 = scmp.lt.s32.totalorder (!%p201_p3), %s537_s15, 1  ;;  %v280_v0 = vld [vmem:[%s621_s1] sm:$0xff] (!%p201_p3)  ;;  %v547_v1 = vmov (!%p201_p3), 0.0   ;;  %v548_v2 = vmov (!%p201_p3), 0   ;;  %vm286_vm0 = vcmask (!%p201_p3), 195584  }
   0x7   : > { %204 = sbr.rel (%p201_p3) target bundleno = 249 (0xf9), region = 36  ;;  %354 = vmatprep.mubr.f32.mxu0 (!%p201_p3), %v547_v1  ;;  %522 = vset.pattern.permute.xlu0 (!%p201_p3), %v548_v2  ;;  %v273_v11 = vld [vmem:[%s620_s0] sm:$0xff] (!%p201_p3) }
   0x8   : > { %283 = vperm.xlu0 (!%p201_p3), %522, %v280_v0  }
   0xe   : > { %s630_s15 = smov (!%p244_p4, %s537_s15), 1 }
   0xf   : > { %s495_s21 = smul.u32 48, %s630_s15  ;;  %s489_s27 = sshll.u32 %s630_s15, 4 }
  0x10   : > { %s261_s30 = scalar_lea.vmem %s623_s3, %s489_s27  ;;  %s271_s7 = scalar_lea.vmem %s624_s4, %s489_s27 }
  0x11   : > { %s251_s24 = scalar_lea.vmem %s622_s2, %s495_s21  ;;  %v363_v16 = vld [vmem:[%s261_s30] sm:$0xff]  ;;  %v364_v19 = vld [vmem:[%s261_s30 + $0x8] sm:$0xff] }
  0x12   : > { %v275_v3 = vld [vmem:[%s251_s24 + $0x8] sm:$0xff]  ;;  %v277_v4 = vld [vmem:[%s251_s24 + $0x18] sm:$0xff]  ;;  %v274_v5 = vld [vmem:[%s251_s24] sm:$0xff] }
  0x13   : > { %v491_v6 = vpack.c.bf16 %v277_v4, %v275_v3  ;;  %v276_v7 = vld [vmem:[%s251_s24 + $0x10] sm:$0xff]  ;;  %v279_v9 = vld [vmem:[%s251_s24 + $0x28] sm:$0xff]  ;;  %v278_v10 = vld [vmem:[%s251_s24 + $0x20] sm:$0xff] }
  0x14   : > { %v493_v8 = vpack.c.bf16 %v276_v7, %v274_v5 }
  0x15   : > { %492 = vmatprep.subr.bf16.mxu0 %v491_v6 }
  0x16   : > { %494 = vmatpush1.bf16.msra.mxu0 %v493_v8 }
  0x17   : > { %294 = vmatprep.subr.mxu0 %v279_v9 }
  0x1a   : > { %295 = vmatpush1.msra.mxu0 %v278_v10 }
  0x1b   : > { %486 = vmatmul.mubr.msk.f32.vlgmr.msra.gmra.mrb[0].mxu0 %vm286_vm0, %v273_v11 }
  0x87   : > { %v284_v12 = vpop.permute.xlu0 %283 }
  0xee   : > { %v356_v13 = vpop.f32.mrb[0].mxu0 }
  0xef   : > { %v357_v14 = vadd.f32 %v356_v13, %v284_v12  ;;  %v358_v15 = vpop.f32.mrb[1].mxu0 }
  0xf0   : > { %v359_v17 = vadd.f32 %v358_v15, %v284_v12 }
  0xf1   : > { %v361_v18 = vmul.f32 0.2, %v357_v14 }
  0xf2   : > { %v362_v20 = vmul.f32 0.2, %v359_v17 }
  0xf3   : > { %v365_v21 = vadd.f32 %v363_v16, %v361_v18 }
  0xf4   : > { %v366_v22 = vadd.f32 %v364_v19, %v362_v20 }
  0xf5   : > { %v367_v23 = vmax.f32 %v365_v21, 0.0 }
  0xf6   : > { %v368_v24 = vmax.f32 %v366_v22, 0.0 }
  0xf7   : > { %369 = vst [vmem:[%s271_s7] sm:$0xff] %v367_v23 }
  0xf8   : > { %370 = vst [vmem:[%s271_s7 + $0x8] sm:$0xff] %v368_v24 }
  0xf9 PF: > { %s14_s17 = sadd.s32 1, %s545_s17   ;;  %s625_s15 = smov %s541_s16 }
  0xfa   : > { %p11_p5 = scmp.ge.s32.totalorder %s14_s17, 4   ;;  %s626_s16 = smov %s628_s18 }
  0xfc   :  { %13 = sbr.rel (!%p11_p5) target bundleno = 2 (0x2), region = 69 }

// kernel: generator_forward.103
= control target key start
LH: loop header
LB: loop body
LE: loop exit
PB: predicated region body
PF: predicated region fallthrough
CT: control target
= control target key end

     0   :  { %s596_s15 = smov 0   ;;  %s598_s16 = smov 0   ;;  %s642_s0 = inlined_call_operand.vmem [shape: f32[3,24], index: 0, kind: input, shape index: {}]   ;;  %s643_s1 = inlined_call_operand.vmem [shape: f32[3,1], index: 1, kind: input, shape index: {}]   ;;  %s644_s2 = inlined_call_operand.vmem [shape: f32[2,24,256], index: 2, kind: input, shape index: {}]   ;;  %s645_s3 = inlined_call_operand.vmem [shape: f32[2,3,256], index: 3, kind: input, shape index: {}]   ;;  %s646_s4 = inlined_call_operand.vmem [shape: f32[2,3,256], index: 4, kind: output, shape index: {}]  }
   0x1   :  { %s600_s17 = smov 0  }
   0x2 LB: > { %s26_s18 = sadd.s32 1, %s563_s16  ;;  %p497_p0 = scmp.ge.s32.totalorder %s567_s17, 1  ;;  %s567_s17 = sphi %s600_s17, %s14_s17   ;;  %s563_s16 = sphi %s598_s16, %s648_s16   ;;  %s559_s15 = sphi %s596_s15, %s647_s15  }
   0x3   : > { %p28_p1 = scmp.ge.s32.totalorder %s26_s18, 2  ;;  %p200_p2 = scmp.lt.s32.totalorder %s567_s17, 3 }
   0x5   : > { %s650_s18 = smov (%p28_p1, %s26_s18), 0  ;;  %p201_p3 = pnand %p497_p0, %p200_p2 }
   0x6   : > { %p244_p4 = scmp.lt.s32.totalorder (!%p201_p3), %s559_s15, 1  ;;  %v569_v0 = vmov (!%p201_p3), 0.0   ;;  %v570_v1 = vmov (!%p201_p3), 0   ;;  %v286_v2 = vld [vmem:[%s643_s1] sm:$0x7] (!%p201_p3)  ;;  %vm292_vm0 = vcmask (!%p201_p3), 195584  }
   0x7   : > { %204 = sbr.rel (%p201_p3) target bundleno = 268 (0x10c), region = 36  ;;  %360 = vmatprep.mubr.f32.mxu0 (!%p201_p3), %v569_v0  ;;  %539 = vset.pattern.permute.xlu0 (!%p201_p3), %v570_v1  ;;  %v285_v17 = vld [vmem:[%s642_s0] sm:$0x7] (!%p201_p3) }
   0x8   : > { %289 = vperm.xlu0 (!%p201_p3), %539, %v286_v2  }
   0xe   : > { %s652_s15 = smov (!%p244_p4, %s559_s15), 1 }
   0xf   : > { %s512_s21 = smul.u32 48, %s652_s15  ;;  %s506_s27 = sshll.u32 %s652_s15, 3 }
  0x10   : > { %s261_s30 = scalar_lea.vmem %s645_s3, %s506_s27  ;;  %s271_s7 = scalar_lea.vmem %s646_s4, %s506_s27 }
  0x11   : > { %s251_s24 = scalar_lea.vmem %s644_s2, %s512_s21  ;;  %v367_v18 = vld [vmem:[%s261_s30] sm:$0x77] }
  0x12   : > { %v274_v3 = vld [vmem:[%s251_s24 + $0x8] sm:$0xff]  ;;  %v276_v4 = vld [vmem:[%s251_s24 + $0x18] sm:$0xff]  ;;  %v273_v5 = vld [vmem:[%s251_s24] sm:$0xff]  ;;  %v369_v21 = vcombine.high %v367_v18, %v367_v18 }
  0x13   : > { %v280_v6 = vmax.f32 %v274_v3, 0.0  ;;  %v282_v7 = vmax.f32 %v276_v4, 0.0  ;;  %v275_v8 = vld [vmem:[%s251_s24 + $0x10] sm:$0xff]  ;;  %v279_v9 = vmax.f32 %v273_v5, 0.0  ;;  %v278_v10 = vld [vmem:[%s251_s24 + $0x28] sm:$0xff]  ;;  %v277_v14 = vld [vmem:[%s251_s24 + $0x20] sm:$0xff] }
  0x14   : > { %v281_v11 = vmax.f32 %v275_v8, 0.0  ;;  %v284_v13 = vmax.f32 %v278_v10, 0.0  ;;  %v283_v16 = vmax.f32 %v277_v14, 0.0 }
  0x15   : > { %v508_v12 = vpack.c.bf16 %v282_v7, %v280_v6 }
  0x16   : > { %v510_v15 = vpack.c.bf16 %v281_v11, %v279_v9 }
  0x17   : > { %509 = vmatprep.subr.bf16.mxu0 %v508_v12 }
  0x18   : > { %511 = vmatpush1.bf16.msra.mxu0 %v510_v15 }
  0x19   : > { %300 = vmatprep.subr.mxu0 %v284_v13 }
  0x1c   : > { %301 = vmatpush1.msra.mxu0 %v283_v16 }
  0x1d   : > { %503 = vmatmul.mubr.msk.f32.vlgmr.msra.gmra.mrb[0].mxu0 %vm292_vm0, %v285_v17 }
  0x87   : > { %v290_v19 = vpop.permute.xlu0 %289 }
  0xf0   : > { %v362_v20 = vpop.f32.mrb[0].mxu0 }
  0xf1   : > { %v363_v22 = vadd.f32 %v362_v20, %v290_v19  ;;  %v364_v23 = vpop.f32.mrb[1].mxu0 }
  0xf2   : > { %v365_v24 = vadd.f32 %v364_v23, %v290_v19 }
  0xf3   : > { %v371_v25 = vadd.f32 %v367_v18, %v363_v22 }
  0xf4   : > { %v372_v26 = vadd.f32 %v369_v21, %v365_v24 }
  0xf5   : > { %541 = vtanh.f32 %v371_v25 }
  0xf6   : > { %543 = vtanh.f32 %v372_v26 }
  0xff   : > { %v542_v27 = vpop.eup %541 }
 0x100   : > { %v544_v28 = vpop.eup %543  ;;  %v375_v29 = vadd.f32 1.0, %v542_v27 }
 0x101   : > { %v376_v30 = vadd.f32 1.0, %v544_v28 }
 0x102   : > { %v377_v31 = vmul.f32 0.5, %v375_v29 }
 0x103   : > { %v378_v32 = vmul.f32 0.5, %v376_v30 }
 0x104   : > { %v379_v33 = vmax.f32 %v377_v31, 0.0 }
 0x105   : > { %v380_v34 = vmax.f32 %v378_v32, 0.0 }
 0x106   : > { %v381_v35 = vmin.f32 %v379_v33, 1.0 }
 0x107   : > { %v382_v36 = vmin.f32 %v380_v34, 1.0 }
 0x109   : > { %v385_v37 = vcombine.low %v381_v35, %v382_v36 }
 0x10b   : > { %387 = vst [vmem:[%s271_s7] sm:$0x77] %v385_v37 }
 0x10c PF: > { %s14_s17 = sadd.s32 1, %s567_s17   ;;  %s647_s15 = smov %s563_s16 }
 0x10d   : > { %p11_p5 = scmp.ge.s32.totalorder %s14_s17, 4   ;;  %s648_s16 = smov %s650_s18 }
 0x10f   :  { %13 = sbr.rel (!%p11_p5) target bundleno = 2 (0x2), region = 69 }

</bundles_post_ra>
